<compile_context>
chip_gen: v7x
topology: tpu7x:2x2x1
jax: 0.10.0
libtpu: 0.0.40
codegen_flags: <defaults>
</compile_context>

<pallas_src>
import jax
import jax.numpy as jnp
from jax.experimental import pallas as pl

# ---- small synthetic config (stands in for microsoft/deberta-v3-base) ----
VOCAB = 128
HIDDEN = 32          # hidden_size
NUM_HEADS = 2
HEAD_DIM = HIDDEN // NUM_HEADS
INTERMEDIATE = 64
NUM_LAYERS = 2
NUM_LABELS = 3
LOGITS_PAD = 128     # lane-dense logits slab width (sliced back in wrapper)
SEQ = 8
BATCH = 2
LN_EPS = 1e-7


# ---------------------------- in-kernel helpers ----------------------------
def _layer_norm(x, gamma, beta, eps=LN_EPS):
    mu = jnp.mean(x, axis=-1, keepdims=True)
    var = jnp.mean((x - mu) ** 2, axis=-1, keepdims=True)
    return (x - mu) * jax.lax.rsqrt(var + eps) * gamma + beta


def _erf(x):
    # Abramowitz & Stegun 7.1.26 (max abs err ~1.5e-7 in exact arithmetic).
    # The inner divide runs on the EUP via pl.reciprocal(approx=True)
    # (otherwise-idle slot); ~1e-3 relative error is acceptable here.
    a1, a2, a3, a4, a5 = (0.254829592, -0.284496736, 1.421413741,
                          -1.453152027, 1.061405429)
    p = 0.3275911
    sgn = jnp.where(x >= 0.0, 1.0, -1.0)
    ax = jnp.abs(x)
    t = pl.reciprocal(1.0 + p * ax, approx=True)
    poly = ((((a5 * t + a4) * t + a3) * t + a2) * t + a1) * t
    return sgn * (1.0 - poly * jnp.exp(-(ax * ax)))


def _gelu_exact(x):
    # HF DeBERTa-v2 uses exact (erf) GELU, not the tanh approximation.
    return 0.5 * x * (1.0 + _erf(x * 0.7071067811865476))


# ---------------------------- fused Pallas kernel ---------------------------
def f25net_kernel(x_ref, mask_ref, embg_ref, embb_ref,
                  wq_ref, wk_ref, wv_ref, bq_ref, bk_ref, bv_ref,
                  wo_ref, bo_ref, ln1g_ref, ln1b_ref,
                  wi_ref, bi_ref, wo2_ref, bo2_ref,
                  ln2g_ref, ln2b_ref,
                  clsw_ref, clsb_ref,
                  hid_ref, logits_ref):
    B, S, H = x_ref.shape
    R = B * S
    scale = 1.0 / (HEAD_DIM ** 0.5)

    # Embedding LayerNorm; activations folded to (R, H) and kept in vregs for
    # the entire fused stack (no HBM round trips between layers).
    x2 = _layer_norm(x_ref[...].reshape(R, H), embg_ref[...], embb_ref[...])

    # Additive key mask, broadcast exactly once (hoisted above all loops).
    neg = jnp.broadcast_to((1.0 - mask_ref[...]) * -1e9, (B, S, S))

    for layer in range(NUM_LAYERS):          # static unroll: whole stack fused
        xb = x2.astype(jnp.bfloat16)

        # ---- multi-head self-attention (per-head weights on a leading axis;
        #      no lane-axis activation slicing anywhere) ----
        ctxs = []
        for h in range(NUM_HEADS):           # static unroll (NUM_HEADS=2)
            q = (jnp.dot(xb, wq_ref[layer, h],
                         preferred_element_type=jnp.float32) + bq_ref[layer, h])
            k = (jnp.dot(xb, wk_ref[layer, h],
                         preferred_element_type=jnp.float32) + bk_ref[layer, h])
            v = (jnp.dot(xb, wv_ref[layer, h],
                         preferred_element_type=jnp.float32) + bv_ref[layer, h])
            q3 = q.reshape(B, S, HEAD_DIM)
            k3 = k.reshape(B, S, HEAD_DIM)
            v3 = v.reshape(B, S, HEAD_DIM)

            s = jnp.einsum('bqd,bkd->bqk', q3.astype(jnp.bfloat16),
                           k3.astype(jnp.bfloat16),
                           preferred_element_type=jnp.float32)      # (B, S, S)
            s = s * scale + neg
            m = jnp.max(s, axis=-1, keepdims=True)
            p = jnp.exp(s - m)
            # Exact divide: with max-subtraction the denominator is >= 1, so a
            # fully masked key row degrades to a uniform distribution (no NaN),
            # and there is no ~1e-3 approx-reciprocal error vs. the reference.
            p = p / jnp.sum(p, axis=-1, keepdims=True)

            ctx = jnp.einsum('bqk,bkd->bqd', p.astype(jnp.bfloat16),
                             v3.astype(jnp.bfloat16),
                             preferred_element_type=jnp.float32)    # (B, S, Dh)
            ctxs.append(ctx.reshape(R, HEAD_DIM))

        # Single-vreg lane merge of the per-head contexts, then ONE (R,H)@(H,H)
        # output projection (replaces the per-head K=16 fold matmuls).
        ctx_full = jnp.concatenate(ctxs, axis=-1)                   # (R, H)
        attn2 = (jnp.dot(ctx_full.astype(jnp.bfloat16), wo_ref[layer],
                         preferred_element_type=jnp.float32) + bo_ref[layer])

        h1 = _layer_norm(x2 + attn2, ln1g_ref[layer], ln1b_ref[layer])

        # ---- feed-forward ----
        ff = (jnp.dot(h1.astype(jnp.bfloat16), wi_ref[layer],
                      preferred_element_type=jnp.float32) + bi_ref[layer])
        ff = _gelu_exact(ff)
        ff = (jnp.dot(ff.astype(jnp.bfloat16), wo2_ref[layer],
                      preferred_element_type=jnp.float32) + bo2_ref[layer])

        x2 = _layer_norm(h1 + ff, ln2g_ref[layer], ln2b_ref[layer])

    # ---- outputs: last_hidden_state (as (R,H) view) + fused CLS head ----
    hid_ref[...] = x2                                               # (R, H)
    cls = x2.reshape(B, S, H)[:, 0, :]                              # (B, H)
    # Classifier weight is zero-padded to 128 lanes -> unmasked lane-dense
    # store; bf16 MXU inputs with f32 accumulation like the rest of the stack.
    logits_ref[...] = (jnp.dot(cls.astype(jnp.bfloat16), clsw_ref[...],
                               preferred_element_type=jnp.float32)
                       + clsb_ref[...])


# ---------------------------- wrapper ----------------------------------------
_WEIGHT_ORDER = ["embg", "embb",
                 "wq", "wk", "wv", "bq", "bk", "bv",
                 "wo", "bo", "ln1g", "ln1b",
                 "wi", "bi", "wo2", "bo2",
                 "ln2g", "ln2b", "clsw", "clsb"]


def f25net_encoder_pallas(x_emb, mask3, packed):
    B, S, H = x_emb.shape
    args = [packed[k] for k in _WEIGHT_ORDER]
    hid2, logits_pad = pl.pallas_call(
        f25net_kernel,
        out_shape=(jax.ShapeDtypeStruct((B * S, H), jnp.float32),
                   jax.ShapeDtypeStruct((B, LOGITS_PAD), jnp.float32)),
        # Grid-less call: every operand maps whole into VMEM (~50 KiB total).
    )(x_emb, mask3, *args)
    return hid2.reshape(B, S, H), logits_pad[:, :NUM_LABELS]


# ---------------------------- parameters -------------------------------------
def init_params(key):
    keys = iter(jax.random.split(key, 8 + 16 * NUM_LAYERS))

    def nrm(shape, scale=0.02):
        return (scale * jax.random.normal(next(keys), shape)).astype(jnp.float32)

    params = {
        "word_emb": nrm((VOCAB, HIDDEN)),
        "emb_ln_g": jnp.ones((1, HIDDEN), jnp.float32),
        "emb_ln_b": jnp.zeros((1, HIDDEN), jnp.float32),
        "cls_w": nrm((HIDDEN, NUM_LABELS)),
        "cls_b": jnp.zeros((NUM_LABELS,), jnp.float32),
        "layers": [],
    }
    for _ in range(NUM_LAYERS):
        lp = {
            "wq": nrm((HIDDEN, HIDDEN)), "bq": jnp.zeros((1, HIDDEN), jnp.float32),
            "wk": nrm((HIDDEN, HIDDEN)), "bk": jnp.zeros((1, HIDDEN), jnp.float32),
            "wv": nrm((HIDDEN, HIDDEN)), "bv": jnp.zeros((1, HIDDEN), jnp.float32),
            "wo": nrm((HIDDEN, HIDDEN)), "bo": jnp.zeros((1, HIDDEN), jnp.float32),
            "ln1_g": jnp.ones((1, HIDDEN), jnp.float32),
            "ln1_b": jnp.zeros((1, HIDDEN), jnp.float32),
            "wi": nrm((HIDDEN, INTERMEDIATE)),
            "bi": jnp.zeros((1, INTERMEDIATE), jnp.float32),
            "wo2": nrm((INTERMEDIATE, HIDDEN)),
            "bo2": jnp.zeros((1, HIDDEN), jnp.float32),
            "ln2_g": jnp.ones((1, HIDDEN), jnp.float32),
            "ln2_b": jnp.zeros((1, HIDDEN), jnp.float32),
        }
        params["layers"].append(lp)
    return params


def pack_params(params):
    """Kernel-friendly layout: per-head Q/K/V on a leading (non-lane) axis,
    stacked layer axis, bf16 matmul weights, 128-lane-padded classifier."""
    H, N, Dh = HIDDEN, NUM_HEADS, HEAD_DIM
    layers = params["layers"]

    def per_head_w(name):
        # (H, H) -> (N, H, Dh): head h reads columns [h*Dh:(h+1)*Dh] of W.
        return jnp.stack([lp[name].reshape(H, N, Dh).transpose(1, 0, 2)
                          for lp in layers]).astype(jnp.bfloat16)   # (L,N,H,Dh)

    def per_head_b(name):
        return jnp.stack([lp[name].reshape(N, 1, Dh) for lp in layers])

    def stk(name, dtype=jnp.float32):
        return jnp.stack([lp[name] for lp in layers]).astype(dtype)

    clsw_pad = jnp.zeros((H, LOGITS_PAD), jnp.float32)
    clsw_pad = clsw_pad.at[:, :NUM_LABELS].set(params["cls_w"]).astype(jnp.bfloat16)
    clsb_pad = jnp.zeros((1, LOGITS_PAD), jnp.float32)
    clsb_pad = clsb_pad.at[0, :NUM_LABELS].set(params["cls_b"])

    return {
        "embg": params["emb_ln_g"], "embb": params["emb_ln_b"],
        "wq": per_head_w("wq"), "wk": per_head_w("wk"), "wv": per_head_w("wv"),
        "bq": per_head_b("bq"), "bk": per_head_b("bk"), "bv": per_head_b("bv"),
        "wo": stk("wo", jnp.bfloat16), "bo": stk("bo"),
        "ln1g": stk("ln1_g"), "ln1b": stk("ln1_b"),
        "wi": stk("wi", jnp.bfloat16), "bi": stk("bi"),
        "wo2": stk("wo2", jnp.bfloat16), "bo2": stk("bo2"),
        "ln2g": stk("ln2_g"), "ln2b": stk("ln2_b"),
        "clsw": clsw_pad, "clsb": clsb_pad,
    }


# ---------------------------- forward (F25Net.forward) -----------------------
def _forward_impl(params, packed, input_ids, attention_mask):
    B, S = input_ids.shape
    mask3 = attention_mask.astype(jnp.float32).reshape(B, 1, S)
    # TODO(synk): token-id embedding gather stays in plain JAX (data-dependent
    # gather; not a rectangular BlockSpec fit at this size).
    x = params["word_emb"][input_ids]
    hidden, logits = f25net_encoder_pallas(x, mask3, packed)
    # F25Net returns ModelOutput(logits, loss=None, last_hidden_state, ...)
    return {"logits": logits, "loss": None,
            "last_hidden_state": hidden,
            "attentions": None, "hidden_states": None}


_forward_jit = jax.jit(_forward_impl)


def f25net_forward(params, packed, input_ids, attention_mask=None):
    if attention_mask is None:
        attention_mask = jnp.ones(input_ids.shape, jnp.float32)
    return _forward_jit(params, packed, input_ids, attention_mask)


# ---------------------------- main -------------------------------------------
if __name__ == "__main__":
    key = jax.random.PRNGKey(0)
    pkey, ikey = jax.random.split(key)
    params = init_params(pkey)
    packed = pack_params(params)

    input_ids = jax.random.randint(ikey, (BATCH, SEQ), 0, VOCAB, dtype=jnp.int32)
    attention_mask = jnp.ones((BATCH, SEQ), jnp.float32)
    attention_mask = attention_mask.at[1, SEQ - 2:].set(0.0)  # exercise padding mask

    out = f25net_forward(params, packed, input_ids, attention_mask)
    jax.block_until_ready(out["logits"])
    jax.block_until_ready(out["last_hidden_state"])

    assert out["logits"].shape == (BATCH, NUM_LABELS)
    assert out["last_hidden_state"].shape == (BATCH, SEQ, HIDDEN)
    assert bool(jnp.all(jnp.isfinite(out["logits"])))
    assert bool(jnp.all(jnp.isfinite(out["last_hidden_state"])))
    print("KERNEL_OK")
</pallas_src>

<mosaic_0001>
module attributes {stable_mosaic.version = 11 : i64} {
  func.func @f25net_kernel(%arg0: memref<2x8x32xf32, #tpu.memory_space<vmem>>, %arg1: memref<2x1x8xf32, #tpu.memory_space<vmem>>, %arg2: memref<1x32xf32, #tpu.memory_space<vmem>>, %arg3: memref<1x32xf32, #tpu.memory_space<vmem>>, %arg4: memref<2x2x32x16xbf16, #tpu.memory_space<vmem>>, %arg5: memref<2x2x32x16xbf16, #tpu.memory_space<vmem>>, %arg6: memref<2x2x32x16xbf16, #tpu.memory_space<vmem>>, %arg7: memref<2x2x1x16xf32, #tpu.memory_space<vmem>>, %arg8: memref<2x2x1x16xf32, #tpu.memory_space<vmem>>, %arg9: memref<2x2x1x16xf32, #tpu.memory_space<vmem>>, %arg10: memref<2x32x32xbf16, #tpu.memory_space<vmem>>, %arg11: memref<2x1x32xf32, #tpu.memory_space<vmem>>, %arg12: memref<2x1x32xf32, #tpu.memory_space<vmem>>, %arg13: memref<2x1x32xf32, #tpu.memory_space<vmem>>, %arg14: memref<2x32x64xbf16, #tpu.memory_space<vmem>>, %arg15: memref<2x1x64xf32, #tpu.memory_space<vmem>>, %arg16: memref<2x64x32xbf16, #tpu.memory_space<vmem>>, %arg17: memref<2x1x32xf32, #tpu.memory_space<vmem>>, %arg18: memref<2x1x32xf32, #tpu.memory_space<vmem>>, %arg19: memref<2x1x32xf32, #tpu.memory_space<vmem>>, %arg20: memref<32x128xbf16, #tpu.memory_space<vmem>>, %arg21: memref<1x128xf32, #tpu.memory_space<vmem>>, %arg22: memref<16x32xf32, #tpu.memory_space<vmem>>, %arg23: memref<2x128xf32, #tpu.memory_space<vmem>>) attributes {dimension_semantics = [], scalar_prefetch = 0 : i64, scratch_operands = 0 : i64, tpu.core_type = #tpu.core_type<tc>} {
    %c0 = arith.constant 0 : index
    %c0_0 = arith.constant 0 : index
    %c0_1 = arith.constant 0 : index
    %0 = vector.load %arg0[%c0, %c0_0, %c0_1] : memref<2x8x32xf32, #tpu.memory_space<vmem>>, vector<2x8x32xf32>
    %1 = vector.shape_cast %0 : vector<2x8x32xf32> to vector<16x32xf32>
    %c0_2 = arith.constant 0 : index
    %c0_3 = arith.constant 0 : index
    %2 = vector.load %arg2[%c0_2, %c0_3] : memref<1x32xf32, #tpu.memory_space<vmem>>, vector<1x32xf32>
    %c0_4 = arith.constant 0 : index
    %c0_5 = arith.constant 0 : index
    %3 = vector.load %arg3[%c0_4, %c0_5] : memref<1x32xf32, #tpu.memory_space<vmem>>, vector<1x32xf32>
    %cst = arith.constant dense<0.000000e+00> : vector<16xf32>
    %4 = vector.multi_reduction <add>, %1, %cst [1] : vector<16x32xf32> to vector<16xf32>
    %5 = vector.shape_cast %4 : vector<16xf32> to vector<16x1xf32>
    %cst_6 = arith.constant 3.200000e+01 : f32
    %6 = vector.broadcast %cst_6 : f32 to vector<16x1xf32>
    %7 = arith.divf %5, %6 : vector<16x1xf32>
    %8 = vector.broadcast %7 : vector<16x1xf32> to vector<16x32xf32>
    %9 = arith.subf %1, %8 : vector<16x32xf32>
    %10 = arith.mulf %9, %9 : vector<16x32xf32>
    %cst_7 = arith.constant dense<0.000000e+00> : vector<16xf32>
    %11 = vector.multi_reduction <add>, %10, %cst_7 [1] : vector<16x32xf32> to vector<16xf32>
    %12 = vector.shape_cast %11 : vector<16xf32> to vector<16x1xf32>
    %cst_8 = arith.constant 3.200000e+01 : f32
    %13 = vector.broadcast %cst_8 : f32 to vector<16x1xf32>
    %14 = arith.divf %12, %13 : vector<16x1xf32>
    %15 = vector.broadcast %7 : vector<16x1xf32> to vector<16x32xf32>
    %16 = arith.subf %1, %15 : vector<16x32xf32>
    %cst_9 = arith.constant 1.000000e-07 : f32
    %17 = vector.broadcast %cst_9 : f32 to vector<16x1xf32>
    %18 = arith.addf %14, %17 : vector<16x1xf32>
    %19 = math.rsqrt %18 : vector<16x1xf32>
    %20 = vector.broadcast %19 : vector<16x1xf32> to vector<16x32xf32>
    %21 = arith.mulf %16, %20 : vector<16x32xf32>
    %22 = vector.broadcast %2 : vector<1x32xf32> to vector<16x32xf32>
    %23 = arith.mulf %21, %22 : vector<16x32xf32>
    %24 = vector.broadcast %3 : vector<1x32xf32> to vector<16x32xf32>
    %25 = arith.addf %23, %24 : vector<16x32xf32>
    %c0_10 = arith.constant 0 : index
    %c0_11 = arith.constant 0 : index
    %c0_12 = arith.constant 0 : index
    %26 = vector.load %arg1[%c0_10, %c0_11, %c0_12] : memref<2x1x8xf32, #tpu.memory_space<vmem>>, vector<2x1x8xf32>
    %cst_13 = arith.constant 1.000000e+00 : f32
    %27 = vector.broadcast %cst_13 : f32 to vector<2x1x8xf32>
    %28 = arith.subf %27, %26 : vector<2x1x8xf32>
    %cst_14 = arith.constant -1.000000e+09 : f32
    %29 = vector.broadcast %cst_14 : f32 to vector<2x1x8xf32>
    %30 = arith.mulf %28, %29 : vector<2x1x8xf32>
    %31 = vector.shape_cast %30 : vector<2x1x8xf32> to vector<2x1x8xf32>
    %32 = vector.broadcast %31 : vector<2x1x8xf32> to vector<2x8x8xf32>
    %33 = arith.truncf %25 : vector<16x32xf32> to vector<16x32xbf16>
    %c0_15 = arith.constant 0 : index
    %c0_16 = arith.constant 0 : index
    %c0_17 = arith.constant 0 : index
    %c0_18 = arith.constant 0 : index
    %34 = vector.load %arg4[%c0_15, %c0_16, %c0_17, %c0_18] : memref<2x2x32x16xbf16, #tpu.memory_space<vmem>>, vector<1x1x32x16xbf16>
    %35 = vector.shape_cast %34 : vector<1x1x32x16xbf16> to vector<32x16xbf16>
    %cst_19 = arith.constant dense<0.000000e+00> : vector<16x16xf32>
    %36 = tpu.matmul %33, %35, %cst_19 {dimension_numbers = #tpu.dot_dimension_numbers<[1], [0], [0], [1], [0, 0, 1, 1], [], []>} : vector<16x32xbf16>, vector<32x16xbf16>, vector<16x16xf32> -> vector<16x16xf32>
    %c0_20 = arith.constant 0 : index
    %c0_21 = arith.constant 0 : index
    %c0_22 = arith.constant 0 : index
    %c0_23 = arith.constant 0 : index
    %37 = vector.load %arg7[%c0_20, %c0_21, %c0_22, %c0_23] : memref<2x2x1x16xf32, #tpu.memory_space<vmem>>, vector<1x1x1x16xf32>
    %38 = vector.shape_cast %37 : vector<1x1x1x16xf32> to vector<1x16xf32>
    %39 = vector.broadcast %38 : vector<1x16xf32> to vector<16x16xf32>
    %40 = arith.addf %36, %39 : vector<16x16xf32>
    %c0_24 = arith.constant 0 : index
    %c0_25 = arith.constant 0 : index
    %c0_26 = arith.constant 0 : index
    %c0_27 = arith.constant 0 : index
    %41 = vector.load %arg5[%c0_24, %c0_25, %c0_26, %c0_27] : memref<2x2x32x16xbf16, #tpu.memory_space<vmem>>, vector<1x1x32x16xbf16>
    %42 = vector.shape_cast %41 : vector<1x1x32x16xbf16> to vector<32x16xbf16>
    %cst_28 = arith.constant dense<0.000000e+00> : vector<16x16xf32>
    %43 = tpu.matmul %33, %42, %cst_28 {dimension_numbers = #tpu.dot_dimension_numbers<[1], [0], [0], [1], [0, 0, 1, 1], [], []>} : vector<16x32xbf16>, vector<32x16xbf16>, vector<16x16xf32> -> vector<16x16xf32>
    %c0_29 = arith.constant 0 : index
    %c0_30 = arith.constant 0 : index
    %c0_31 = arith.constant 0 : index
    %c0_32 = arith.constant 0 : index
    %44 = vector.load %arg8[%c0_29, %c0_30, %c0_31, %c0_32] : memref<2x2x1x16xf32, #tpu.memory_space<vmem>>, vector<1x1x1x16xf32>
    %45 = vector.shape_cast %44 : vector<1x1x1x16xf32> to vector<1x16xf32>
    %46 = vector.broadcast %45 : vector<1x16xf32> to vector<16x16xf32>
    %47 = arith.addf %43, %46 : vector<16x16xf32>
    %c0_33 = arith.constant 0 : index
    %c0_34 = arith.constant 0 : index
    %c0_35 = arith.constant 0 : index
    %c0_36 = arith.constant 0 : index
    %48 = vector.load %arg6[%c0_33, %c0_34, %c0_35, %c0_36] : memref<2x2x32x16xbf16, #tpu.memory_space<vmem>>, vector<1x1x32x16xbf16>
    %49 = vector.shape_cast %48 : vector<1x1x32x16xbf16> to vector<32x16xbf16>
    %cst_37 = arith.constant dense<0.000000e+00> : vector<16x16xf32>
    %50 = tpu.matmul %33, %49, %cst_37 {dimension_numbers = #tpu.dot_dimension_numbers<[1], [0], [0], [1], [0, 0, 1, 1], [], []>} : vector<16x32xbf16>, vector<32x16xbf16>, vector<16x16xf32> -> vector<16x16xf32>
    %c0_38 = arith.constant 0 : index
    %c0_39 = arith.constant 0 : index
    %c0_40 = arith.constant 0 : index
    %c0_41 = arith.constant 0 : index
    %51 = vector.load %arg9[%c0_38, %c0_39, %c0_40, %c0_41] : memref<2x2x1x16xf32, #tpu.memory_space<vmem>>, vector<1x1x1x16xf32>
    %52 = vector.shape_cast %51 : vector<1x1x1x16xf32> to vector<1x16xf32>
    %53 = vector.broadcast %52 : vector<1x16xf32> to vector<16x16xf32>
    %54 = arith.addf %50, %53 : vector<16x16xf32>
    %55 = vector.shape_cast %40 : vector<16x16xf32> to vector<2x8x16xf32>
    %56 = vector.shape_cast %47 : vector<16x16xf32> to vector<2x8x16xf32>
    %57 = vector.shape_cast %54 : vector<16x16xf32> to vector<2x8x16xf32>
    %58 = arith.truncf %55 : vector<2x8x16xf32> to vector<2x8x16xbf16>
    %59 = arith.truncf %56 : vector<2x8x16xf32> to vector<2x8x16xbf16>
    "tpu.trace_start"() <{level = 10 : i32, message = "bqd,bkd->bqk"}> : () -> ()
    %cst_42 = arith.constant dense<0.000000e+00> : vector<2x8x8xf32>
    %60 = tpu.matmul %58, %59, %cst_42 {dimension_numbers = #tpu.dot_dimension_numbers<[2], [2], [1], [1], [0, 0, 0, 1, 1, 1], [0], [0]>} : vector<2x8x16xbf16>, vector<2x8x16xbf16>, vector<2x8x8xf32> -> vector<2x8x8xf32>
    "tpu.trace_stop"() : () -> ()
    %cst_43 = arith.constant 2.500000e-01 : f32
    %61 = vector.broadcast %cst_43 : f32 to vector<2x8x8xf32>
    %62 = arith.mulf %60, %61 : vector<2x8x8xf32>
    %63 = arith.addf %62, %32 : vector<2x8x8xf32>
    %cst_44 = arith.constant dense<0xFF800000> : vector<2x8xf32>
    %64 = vector.multi_reduction <maximumf>, %63, %cst_44 [2] : vector<2x8x8xf32> to vector<2x8xf32>
    %65 = vector.shape_cast %64 : vector<2x8xf32> to vector<2x8x1xf32>
    %66 = vector.broadcast %65 : vector<2x8x1xf32> to vector<2x8x8xf32>
    %67 = arith.subf %63, %66 : vector<2x8x8xf32>
    %68 = math.exp %67 : vector<2x8x8xf32>
    %cst_45 = arith.constant dense<0.000000e+00> : vector<2x8xf32>
    %69 = vector.multi_reduction <add>, %68, %cst_45 [2] : vector<2x8x8xf32> to vector<2x8xf32>
    %70 = vector.shape_cast %69 : vector<2x8xf32> to vector<2x8x1xf32>
    %71 = vector.broadcast %70 : vector<2x8x1xf32> to vector<2x8x8xf32>
    %72 = arith.divf %68, %71 : vector<2x8x8xf32>
    %73 = arith.truncf %72 : vector<2x8x8xf32> to vector<2x8x8xbf16>
    %74 = arith.truncf %57 : vector<2x8x16xf32> to vector<2x8x16xbf16>
    "tpu.trace_start"() <{level = 10 : i32, message = "bqk,bkd->bqd"}> : () -> ()
    %cst_46 = arith.constant dense<0.000000e+00> : vector<2x8x16xf32>
    %75 = tpu.matmul %73, %74, %cst_46 {dimension_numbers = #tpu.dot_dimension_numbers<[2], [1], [1], [2], [0, 0, 0, 1, 1, 2], [0], [0]>} : vector<2x8x8xbf16>, vector<2x8x16xbf16>, vector<2x8x16xf32> -> vector<2x8x16xf32>
    "tpu.trace_stop"() : () -> ()
    %76 = vector.shape_cast %75 : vector<2x8x16xf32> to vector<16x16xf32>
    %c0_47 = arith.constant 0 : index
    %c1 = arith.constant 1 : index
    %c0_48 = arith.constant 0 : index
    %c0_49 = arith.constant 0 : index
    %77 = vector.load %arg4[%c0_47, %c1, %c0_48, %c0_49] : memref<2x2x32x16xbf16, #tpu.memory_space<vmem>>, vector<1x1x32x16xbf16>
    %78 = vector.shape_cast %77 : vector<1x1x32x16xbf16> to vector<32x16xbf16>
    %cst_50 = arith.constant dense<0.000000e+00> : vector<16x16xf32>
    %79 = tpu.matmul %33, %78, %cst_50 {dimension_numbers = #tpu.dot_dimension_numbers<[1], [0], [0], [1], [0, 0, 1, 1], [], []>} : vector<16x32xbf16>, vector<32x16xbf16>, vector<16x16xf32> -> vector<16x16xf32>
    %c0_51 = arith.constant 0 : index
    %c1_52 = arith.constant 1 : index
    %c0_53 = arith.constant 0 : index
    %c0_54 = arith.constant 0 : index
    %80 = vector.load %arg7[%c0_51, %c1_52, %c0_53, %c0_54] : memref<2x2x1x16xf32, #tpu.memory_space<vmem>>, vector<1x1x1x16xf32>
    %81 = vector.shape_cast %80 : vector<1x1x1x16xf32> to vector<1x16xf32>
    %82 = vector.broadcast %81 : vector<1x16xf32> to vector<16x16xf32>
    %83 = arith.addf %79, %82 : vector<16x16xf32>
    %c0_55 = arith.constant 0 : index
    %c1_56 = arith.constant 1 : index
    %c0_57 = arith.constant 0 : index
    %c0_58 = arith.constant 0 : index
    %84 = vector.load %arg5[%c0_55, %c1_56, %c0_57, %c0_58] : memref<2x2x32x16xbf16, #tpu.memory_space<vmem>>, vector<1x1x32x16xbf16>
    %85 = vector.shape_cast %84 : vector<1x1x32x16xbf16> to vector<32x16xbf16>
    %cst_59 = arith.constant dense<0.000000e+00> : vector<16x16xf32>
    %86 = tpu.matmul %33, %85, %cst_59 {dimension_numbers = #tpu.dot_dimension_numbers<[1], [0], [0], [1], [0, 0, 1, 1], [], []>} : vector<16x32xbf16>, vector<32x16xbf16>, vector<16x16xf32> -> vector<16x16xf32>
    %c0_60 = arith.constant 0 : index
    %c1_61 = arith.constant 1 : index
    %c0_62 = arith.constant 0 : index
    %c0_63 = arith.constant 0 : index
    %87 = vector.load %arg8[%c0_60, %c1_61, %c0_62, %c0_63] : memref<2x2x1x16xf32, #tpu.memory_space<vmem>>, vector<1x1x1x16xf32>
    %88 = vector.shape_cast %87 : vector<1x1x1x16xf32> to vector<1x16xf32>
    %89 = vector.broadcast %88 : vector<1x16xf32> to vector<16x16xf32>
    %90 = arith.addf %86, %89 : vector<16x16xf32>
    %c0_64 = arith.constant 0 : index
    %c1_65 = arith.constant 1 : index
    %c0_66 = arith.constant 0 : index
    %c0_67 = arith.constant 0 : index
    %91 = vector.load %arg6[%c0_64, %c1_65, %c0_66, %c0_67] : memref<2x2x32x16xbf16, #tpu.memory_space<vmem>>, vector<1x1x32x16xbf16>
    %92 = vector.shape_cast %91 : vector<1x1x32x16xbf16> to vector<32x16xbf16>
    %cst_68 = arith.constant dense<0.000000e+00> : vector<16x16xf32>
    %93 = tpu.matmul %33, %92, %cst_68 {dimension_numbers = #tpu.dot_dimension_numbers<[1], [0], [0], [1], [0, 0, 1, 1], [], []>} : vector<16x32xbf16>, vector<32x16xbf16>, vector<16x16xf32> -> vector<16x16xf32>
    %c0_69 = arith.constant 0 : index
    %c1_70 = arith.constant 1 : index
    %c0_71 = arith.constant 0 : index
    %c0_72 = arith.constant 0 : index
    %94 = vector.load %arg9[%c0_69, %c1_70, %c0_71, %c0_72] : memref<2x2x1x16xf32, #tpu.memory_space<vmem>>, vector<1x1x1x16xf32>
    %95 = vector.shape_cast %94 : vector<1x1x1x16xf32> to vector<1x16xf32>
    %96 = vector.broadcast %95 : vector<1x16xf32> to vector<16x16xf32>
    %97 = arith.addf %93, %96 : vector<16x16xf32>
    %98 = vector.shape_cast %83 : vector<16x16xf32> to vector<2x8x16xf32>
    %99 = vector.shape_cast %90 : vector<16x16xf32> to vector<2x8x16xf32>
    %100 = vector.shape_cast %97 : vector<16x16xf32> to vector<2x8x16xf32>
    %101 = arith.truncf %98 : vector<2x8x16xf32> to vector<2x8x16xbf16>
    %102 = arith.truncf %99 : vector<2x8x16xf32> to vector<2x8x16xbf16>
    "tpu.trace_start"() <{level = 10 : i32, message = "bqd,bkd->bqk"}> : () -> ()
    %cst_73 = arith.constant dense<0.000000e+00> : vector<2x8x8xf32>
    %103 = tpu.matmul %101, %102, %cst_73 {dimension_numbers = #tpu.dot_dimension_numbers<[2], [2], [1], [1], [0, 0, 0, 1, 1, 1], [0], [0]>} : vector<2x8x16xbf16>, vector<2x8x16xbf16>, vector<2x8x8xf32> -> vector<2x8x8xf32>
    "tpu.trace_stop"() : () -> ()
    %cst_74 = arith.constant 2.500000e-01 : f32
    %104 = vector.broadcast %cst_74 : f32 to vector<2x8x8xf32>
    %105 = arith.mulf %103, %104 : vector<2x8x8xf32>
    %106 = arith.addf %105, %32 : vector<2x8x8xf32>
    %cst_75 = arith.constant dense<0xFF800000> : vector<2x8xf32>
    %107 = vector.multi_reduction <maximumf>, %106, %cst_75 [2] : vector<2x8x8xf32> to vector<2x8xf32>
    %108 = vector.shape_cast %107 : vector<2x8xf32> to vector<2x8x1xf32>
    %109 = vector.broadcast %108 : vector<2x8x1xf32> to vector<2x8x8xf32>
    %110 = arith.subf %106, %109 : vector<2x8x8xf32>
    %111 = math.exp %110 : vector<2x8x8xf32>
    %cst_76 = arith.constant dense<0.000000e+00> : vector<2x8xf32>
    %112 = vector.multi_reduction <add>, %111, %cst_76 [2] : vector<2x8x8xf32> to vector<2x8xf32>
    %113 = vector.shape_cast %112 : vector<2x8xf32> to vector<2x8x1xf32>
    %114 = vector.broadcast %113 : vector<2x8x1xf32> to vector<2x8x8xf32>
    %115 = arith.divf %111, %114 : vector<2x8x8xf32>
    %116 = arith.truncf %115 : vector<2x8x8xf32> to vector<2x8x8xbf16>
    %117 = arith.truncf %100 : vector<2x8x16xf32> to vector<2x8x16xbf16>
    "tpu.trace_start"() <{level = 10 : i32, message = "bqk,bkd->bqd"}> : () -> ()
    %cst_77 = arith.constant dense<0.000000e+00> : vector<2x8x16xf32>
    %118 = tpu.matmul %116, %117, %cst_77 {dimension_numbers = #tpu.dot_dimension_numbers<[2], [1], [1], [2], [0, 0, 0, 1, 1, 2], [0], [0]>} : vector<2x8x8xbf16>, vector<2x8x16xbf16>, vector<2x8x16xf32> -> vector<2x8x16xf32>
    "tpu.trace_stop"() : () -> ()
    %119 = vector.shape_cast %118 : vector<2x8x16xf32> to vector<16x16xf32>
    %120 = tpu.concatenate %76, %119 in 1 : vector<16x16xf32>, vector<16x16xf32> -> vector<16x32xf32>
    %121 = arith.truncf %120 : vector<16x32xf32> to vector<16x32xbf16>
    %c0_78 = arith.constant 0 : index
    %c0_79 = arith.constant 0 : index
    %c0_80 = arith.constant 0 : index
    %122 = vector.load %arg10[%c0_78, %c0_79, %c0_80] : memref<2x32x32xbf16, #tpu.memory_space<vmem>>, vector<1x32x32xbf16>
    %123 = vector.shape_cast %122 : vector<1x32x32xbf16> to vector<32x32xbf16>
    %cst_81 = arith.constant dense<0.000000e+00> : vector<16x32xf32>
    %124 = tpu.matmul %121, %123, %cst_81 {dimension_numbers = #tpu.dot_dimension_numbers<[1], [0], [0], [1], [0, 0, 1, 1], [], []>} : vector<16x32xbf16>, vector<32x32xbf16>, vector<16x32xf32> -> vector<16x32xf32>
    %c0_82 = arith.constant 0 : index
    %c0_83 = arith.constant 0 : index
    %c0_84 = arith.constant 0 : index
    %125 = vector.load %arg11[%c0_82, %c0_83, %c0_84] : memref<2x1x32xf32, #tpu.memory_space<vmem>>, vector<1x1x32xf32>
    %126 = vector.shape_cast %125 : vector<1x1x32xf32> to vector<1x32xf32>
    %127 = vector.broadcast %126 : vector<1x32xf32> to vector<16x32xf32>
    %128 = arith.addf %124, %127 : vector<16x32xf32>
    %129 = arith.addf %25, %128 : vector<16x32xf32>
    %c0_85 = arith.constant 0 : index
    %c0_86 = arith.constant 0 : index
    %c0_87 = arith.constant 0 : index
    %130 = vector.load %arg12[%c0_85, %c0_86, %c0_87] : memref<2x1x32xf32, #tpu.memory_space<vmem>>, vector<1x1x32xf32>
    %131 = vector.shape_cast %130 : vector<1x1x32xf32> to vector<1x32xf32>
    %c0_88 = arith.constant 0 : index
    %c0_89 = arith.constant 0 : index
    %c0_90 = arith.constant 0 : index
    %132 = vector.load %arg13[%c0_88, %c0_89, %c0_90] : memref<2x1x32xf32, #tpu.memory_space<vmem>>, vector<1x1x32xf32>
    %133 = vector.shape_cast %132 : vector<1x1x32xf32> to vector<1x32xf32>
    %cst_91 = arith.constant dense<0.000000e+00> : vector<16xf32>
    %134 = vector.multi_reduction <add>, %129, %cst_91 [1] : vector<16x32xf32> to vector<16xf32>
    %135 = vector.shape_cast %134 : vector<16xf32> to vector<16x1xf32>
    %cst_92 = arith.constant 3.200000e+01 : f32
    %136 = vector.broadcast %cst_92 : f32 to vector<16x1xf32>
    %137 = arith.divf %135, %136 : vector<16x1xf32>
    %138 = vector.broadcast %137 : vector<16x1xf32> to vector<16x32xf32>
    %139 = arith.subf %129, %138 : vector<16x32xf32>
    %140 = arith.mulf %139, %139 : vector<16x32xf32>
    %cst_93 = arith.constant dense<0.000000e+00> : vector<16xf32>
    %141 = vector.multi_reduction <add>, %140, %cst_93 [1] : vector<16x32xf32> to vector<16xf32>
    %142 = vector.shape_cast %141 : vector<16xf32> to vector<16x1xf32>
    %cst_94 = arith.constant 3.200000e+01 : f32
    %143 = vector.broadcast %cst_94 : f32 to vector<16x1xf32>
    %144 = arith.divf %142, %143 : vector<16x1xf32>
    %145 = vector.broadcast %137 : vector<16x1xf32> to vector<16x32xf32>
    %146 = arith.subf %129, %145 : vector<16x32xf32>
    %cst_95 = arith.constant 1.000000e-07 : f32
    %147 = vector.broadcast %cst_95 : f32 to vector<16x1xf32>
    %148 = arith.addf %144, %147 : vector<16x1xf32>
    %149 = math.rsqrt %148 : vector<16x1xf32>
    %150 = vector.broadcast %149 : vector<16x1xf32> to vector<16x32xf32>
    %151 = arith.mulf %146, %150 : vector<16x32xf32>
    %152 = vector.broadcast %131 : vector<1x32xf32> to vector<16x32xf32>
    %153 = arith.mulf %151, %152 : vector<16x32xf32>
    %154 = vector.broadcast %133 : vector<1x32xf32> to vector<16x32xf32>
    %155 = arith.addf %153, %154 : vector<16x32xf32>
    %156 = arith.truncf %155 : vector<16x32xf32> to vector<16x32xbf16>
    %c0_96 = arith.constant 0 : index
    %c0_97 = arith.constant 0 : index
    %c0_98 = arith.constant 0 : index
    %157 = vector.load %arg14[%c0_96, %c0_97, %c0_98] : memref<2x32x64xbf16, #tpu.memory_space<vmem>>, vector<1x32x64xbf16>
    %158 = vector.shape_cast %157 : vector<1x32x64xbf16> to vector<32x64xbf16>
    %cst_99 = arith.constant dense<0.000000e+00> : vector<16x64xf32>
    %159 = tpu.matmul %156, %158, %cst_99 {dimension_numbers = #tpu.dot_dimension_numbers<[1], [0], [0], [1], [0, 0, 1, 1], [], []>} : vector<16x32xbf16>, vector<32x64xbf16>, vector<16x64xf32> -> vector<16x64xf32>
    %c0_100 = arith.constant 0 : index
    %c0_101 = arith.constant 0 : index
    %c0_102 = arith.constant 0 : index
    %160 = vector.load %arg15[%c0_100, %c0_101, %c0_102] : memref<2x1x64xf32, #tpu.memory_space<vmem>>, vector<1x1x64xf32>
    %161 = vector.shape_cast %160 : vector<1x1x64xf32> to vector<1x64xf32>
    %162 = vector.broadcast %161 : vector<1x64xf32> to vector<16x64xf32>
    %163 = arith.addf %159, %162 : vector<16x64xf32>
    %cst_103 = arith.constant 5.000000e-01 : f32
    %164 = vector.broadcast %cst_103 : f32 to vector<16x64xf32>
    %165 = arith.mulf %164, %163 : vector<16x64xf32>
    %cst_104 = arith.constant 0.707106769 : f32
    %166 = vector.broadcast %cst_104 : f32 to vector<16x64xf32>
    %167 = arith.mulf %163, %166 : vector<16x64xf32>
    %cst_105 = arith.constant 0.000000e+00 : f32
    %168 = vector.broadcast %cst_105 : f32 to vector<16x64xf32>
    %169 = arith.cmpf oge, %167, %168 : vector<16x64xf32>
    %cst_106 = arith.constant 1.000000e+00 : f32
    %cst_107 = arith.constant -1.000000e+00 : f32
    %170 = vector.broadcast %cst_106 : f32 to vector<16x64xf32>
    %171 = vector.broadcast %cst_107 : f32 to vector<16x64xf32>
    %172 = arith.select %169, %170, %171 : vector<16x64xi1>, vector<16x64xf32>
    %173 = math.absf %167 : vector<16x64xf32>
    %cst_108 = arith.constant 0.327591091 : f32
    %174 = vector.broadcast %cst_108 : f32 to vector<16x64xf32>
    %175 = arith.mulf %174, %173 : vector<16x64xf32>
    %cst_109 = arith.constant 1.000000e+00 : f32
    %176 = vector.broadcast %cst_109 : f32 to vector<16x64xf32>
    %177 = arith.addf %176, %175 : vector<16x64xf32>
    %178 = tpu.reciprocal %177 {approx = true} : vector<16x64xf32> -> vector<16x64xf32>
    %cst_110 = arith.constant 1.06140542 : f32
    %179 = vector.broadcast %cst_110 : f32 to vector<16x64xf32>
    %180 = arith.mulf %179, %178 : vector<16x64xf32>
    %cst_111 = arith.constant -1.45315206 : f32
    %181 = vector.broadcast %cst_111 : f32 to vector<16x64xf32>
    %182 = arith.addf %180, %181 : vector<16x64xf32>
    %183 = arith.mulf %182, %178 : vector<16x64xf32>
    %cst_112 = arith.constant 1.42141378 : f32
    %184 = vector.broadcast %cst_112 : f32 to vector<16x64xf32>
    %185 = arith.addf %183, %184 : vector<16x64xf32>
    %186 = arith.mulf %185, %178 : vector<16x64xf32>
    %cst_113 = arith.constant -0.284496725 : f32
    %187 = vector.broadcast %cst_113 : f32 to vector<16x64xf32>
    %188 = arith.addf %186, %187 : vector<16x64xf32>
    %189 = arith.mulf %188, %178 : vector<16x64xf32>
    %cst_114 = arith.constant 0.254829586 : f32
    %190 = vector.broadcast %cst_114 : f32 to vector<16x64xf32>
    %191 = arith.addf %189, %190 : vector<16x64xf32>
    %192 = arith.mulf %191, %178 : vector<16x64xf32>
    %193 = arith.mulf %173, %173 : vector<16x64xf32>
    %cst_115 = arith.constant 0.000000e+00 : f32
    %194 = vector.broadcast %cst_115 : f32 to vector<16x64xf32>
    %195 = arith.subf %194, %193 : vector<16x64xf32>
    %196 = math.exp %195 : vector<16x64xf32>
    %197 = arith.mulf %192, %196 : vector<16x64xf32>
    %cst_116 = arith.constant 1.000000e+00 : f32
    %198 = vector.broadcast %cst_116 : f32 to vector<16x64xf32>
    %199 = arith.subf %198, %197 : vector<16x64xf32>
    %200 = arith.mulf %172, %199 : vector<16x64xf32>
    %cst_117 = arith.constant 1.000000e+00 : f32
    %201 = vector.broadcast %cst_117 : f32 to vector<16x64xf32>
    %202 = arith.addf %201, %200 : vector<16x64xf32>
    %203 = arith.mulf %165, %202 : vector<16x64xf32>
    %204 = arith.truncf %203 : vector<16x64xf32> to vector<16x64xbf16>
    %c0_118 = arith.constant 0 : index
    %c0_119 = arith.constant 0 : index
    %c0_120 = arith.constant 0 : index
    %205 = vector.load %arg16[%c0_118, %c0_119, %c0_120] : memref<2x64x32xbf16, #tpu.memory_space<vmem>>, vector<1x64x32xbf16>
    %206 = vector.shape_cast %205 : vector<1x64x32xbf16> to vector<64x32xbf16>
    %cst_121 = arith.constant dense<0.000000e+00> : vector<16x32xf32>
    %207 = tpu.matmul %204, %206, %cst_121 {dimension_numbers = #tpu.dot_dimension_numbers<[1], [0], [0], [1], [0, 0, 1, 1], [], []>} : vector<16x64xbf16>, vector<64x32xbf16>, vector<16x32xf32> -> vector<16x32xf32>
    %c0_122 = arith.constant 0 : index
    %c0_123 = arith.constant 0 : index
    %c0_124 = arith.constant 0 : index
    %208 = vector.load %arg17[%c0_122, %c0_123, %c0_124] : memref<2x1x32xf32, #tpu.memory_space<vmem>>, vector<1x1x32xf32>
    %209 = vector.shape_cast %208 : vector<1x1x32xf32> to vector<1x32xf32>
    %210 = vector.broadcast %209 : vector<1x32xf32> to vector<16x32xf32>
    %211 = arith.addf %207, %210 : vector<16x32xf32>
    %212 = arith.addf %155, %211 : vector<16x32xf32>
    %c0_125 = arith.constant 0 : index
    %c0_126 = arith.constant 0 : index
    %c0_127 = arith.constant 0 : index
    %213 = vector.load %arg18[%c0_125, %c0_126, %c0_127] : memref<2x1x32xf32, #tpu.memory_space<vmem>>, vector<1x1x32xf32>
    %214 = vector.shape_cast %213 : vector<1x1x32xf32> to vector<1x32xf32>
    %c0_128 = arith.constant 0 : index
    %c0_129 = arith.constant 0 : index
    %c0_130 = arith.constant 0 : index
    %215 = vector.load %arg19[%c0_128, %c0_129, %c0_130] : memref<2x1x32xf32, #tpu.memory_space<vmem>>, vector<1x1x32xf32>
    %216 = vector.shape_cast %215 : vector<1x1x32xf32> to vector<1x32xf32>
    %cst_131 = arith.constant dense<0.000000e+00> : vector<16xf32>
    %217 = vector.multi_reduction <add>, %212, %cst_131 [1] : vector<16x32xf32> to vector<16xf32>
    %218 = vector.shape_cast %217 : vector<16xf32> to vector<16x1xf32>
    %cst_132 = arith.constant 3.200000e+01 : f32
    %219 = vector.broadcast %cst_132 : f32 to vector<16x1xf32>
    %220 = arith.divf %218, %219 : vector<16x1xf32>
    %221 = vector.broadcast %220 : vector<16x1xf32> to vector<16x32xf32>
    %222 = arith.subf %212, %221 : vector<16x32xf32>
    %223 = arith.mulf %222, %222 : vector<16x32xf32>
    %cst_133 = arith.constant dense<0.000000e+00> : vector<16xf32>
    %224 = vector.multi_reduction <add>, %223, %cst_133 [1] : vector<16x32xf32> to vector<16xf32>
    %225 = vector.shape_cast %224 : vector<16xf32> to vector<16x1xf32>
    %cst_134 = arith.constant 3.200000e+01 : f32
    %226 = vector.broadcast %cst_134 : f32 to vector<16x1xf32>
    %227 = arith.divf %225, %226 : vector<16x1xf32>
    %228 = vector.broadcast %220 : vector<16x1xf32> to vector<16x32xf32>
    %229 = arith.subf %212, %228 : vector<16x32xf32>
    %cst_135 = arith.constant 1.000000e-07 : f32
    %230 = vector.broadcast %cst_135 : f32 to vector<16x1xf32>
    %231 = arith.addf %227, %230 : vector<16x1xf32>
    %232 = math.rsqrt %231 : vector<16x1xf32>
    %233 = vector.broadcast %232 : vector<16x1xf32> to vector<16x32xf32>
    %234 = arith.mulf %229, %233 : vector<16x32xf32>
    %235 = vector.broadcast %214 : vector<1x32xf32> to vector<16x32xf32>
    %236 = arith.mulf %234, %235 : vector<16x32xf32>
    %237 = vector.broadcast %216 : vector<1x32xf32> to vector<16x32xf32>
    %238 = arith.addf %236, %237 : vector<16x32xf32>
    %239 = arith.truncf %238 : vector<16x32xf32> to vector<16x32xbf16>
    %c1_136 = arith.constant 1 : index
    %c0_137 = arith.constant 0 : index
    %c0_138 = arith.constant 0 : index
    %c0_139 = arith.constant 0 : index
    %240 = vector.load %arg4[%c1_136, %c0_137, %c0_138, %c0_139] : memref<2x2x32x16xbf16, #tpu.memory_space<vmem>>, vector<1x1x32x16xbf16>
    %241 = vector.shape_cast %240 : vector<1x1x32x16xbf16> to vector<32x16xbf16>
    %cst_140 = arith.constant dense<0.000000e+00> : vector<16x16xf32>
    %242 = tpu.matmul %239, %241, %cst_140 {dimension_numbers = #tpu.dot_dimension_numbers<[1], [0], [0], [1], [0, 0, 1, 1], [], []>} : vector<16x32xbf16>, vector<32x16xbf16>, vector<16x16xf32> -> vector<16x16xf32>
    %c1_141 = arith.constant 1 : index
    %c0_142 = arith.constant 0 : index
    %c0_143 = arith.constant 0 : index
    %c0_144 = arith.constant 0 : index
    %243 = vector.load %arg7[%c1_141, %c0_142, %c0_143, %c0_144] : memref<2x2x1x16xf32, #tpu.memory_space<vmem>>, vector<1x1x1x16xf32>
    %244 = vector.shape_cast %243 : vector<1x1x1x16xf32> to vector<1x16xf32>
    %245 = vector.broadcast %244 : vector<1x16xf32> to vector<16x16xf32>
    %246 = arith.addf %242, %245 : vector<16x16xf32>
    %c1_145 = arith.constant 1 : index
    %c0_146 = arith.constant 0 : index
    %c0_147 = arith.constant 0 : index
    %c0_148 = arith.constant 0 : index
    %247 = vector.load %arg5[%c1_145, %c0_146, %c0_147, %c0_148] : memref<2x2x32x16xbf16, #tpu.memory_space<vmem>>, vector<1x1x32x16xbf16>
    %248 = vector.shape_cast %247 : vector<1x1x32x16xbf16> to vector<32x16xbf16>
    %cst_149 = arith.constant dense<0.000000e+00> : vector<16x16xf32>
    %249 = tpu.matmul %239, %248, %cst_149 {dimension_numbers = #tpu.dot_dimension_numbers<[1], [0], [0], [1], [0, 0, 1, 1], [], []>} : vector<16x32xbf16>, vector<32x16xbf16>, vector<16x16xf32> -> vector<16x16xf32>
    %c1_150 = arith.constant 1 : index
    %c0_151 = arith.constant 0 : index
    %c0_152 = arith.constant 0 : index
    %c0_153 = arith.constant 0 : index
    %250 = vector.load %arg8[%c1_150, %c0_151, %c0_152, %c0_153] : memref<2x2x1x16xf32, #tpu.memory_space<vmem>>, vector<1x1x1x16xf32>
    %251 = vector.shape_cast %250 : vector<1x1x1x16xf32> to vector<1x16xf32>
    %252 = vector.broadcast %251 : vector<1x16xf32> to vector<16x16xf32>
    %253 = arith.addf %249, %252 : vector<16x16xf32>
    %c1_154 = arith.constant 1 : index
    %c0_155 = arith.constant 0 : index
    %c0_156 = arith.constant 0 : index
    %c0_157 = arith.constant 0 : index
    %254 = vector.load %arg6[%c1_154, %c0_155, %c0_156, %c0_157] : memref<2x2x32x16xbf16, #tpu.memory_space<vmem>>, vector<1x1x32x16xbf16>
    %255 = vector.shape_cast %254 : vector<1x1x32x16xbf16> to vector<32x16xbf16>
    %cst_158 = arith.constant dense<0.000000e+00> : vector<16x16xf32>
    %256 = tpu.matmul %239, %255, %cst_158 {dimension_numbers = #tpu.dot_dimension_numbers<[1], [0], [0], [1], [0, 0, 1, 1], [], []>} : vector<16x32xbf16>, vector<32x16xbf16>, vector<16x16xf32> -> vector<16x16xf32>
    %c1_159 = arith.constant 1 : index
    %c0_160 = arith.constant 0 : index
    %c0_161 = arith.constant 0 : index
    %c0_162 = arith.constant 0 : index
    %257 = vector.load %arg9[%c1_159, %c0_160, %c0_161, %c0_162] : memref<2x2x1x16xf32, #tpu.memory_space<vmem>>, vector<1x1x1x16xf32>
    %258 = vector.shape_cast %257 : vector<1x1x1x16xf32> to vector<1x16xf32>
    %259 = vector.broadcast %258 : vector<1x16xf32> to vector<16x16xf32>
    %260 = arith.addf %256, %259 : vector<16x16xf32>
    %261 = vector.shape_cast %246 : vector<16x16xf32> to vector<2x8x16xf32>
    %262 = vector.shape_cast %253 : vector<16x16xf32> to vector<2x8x16xf32>
    %263 = vector.shape_cast %260 : vector<16x16xf32> to vector<2x8x16xf32>
    %264 = arith.truncf %261 : vector<2x8x16xf32> to vector<2x8x16xbf16>
    %265 = arith.truncf %262 : vector<2x8x16xf32> to vector<2x8x16xbf16>
    "tpu.trace_start"() <{level = 10 : i32, message = "bqd,bkd->bqk"}> : () -> ()
    %cst_163 = arith.constant dense<0.000000e+00> : vector<2x8x8xf32>
    %266 = tpu.matmul %264, %265, %cst_163 {dimension_numbers = #tpu.dot_dimension_numbers<[2], [2], [1], [1], [0, 0, 0, 1, 1, 1], [0], [0]>} : vector<2x8x16xbf16>, vector<2x8x16xbf16>, vector<2x8x8xf32> -> vector<2x8x8xf32>
    "tpu.trace_stop"() : () -> ()
    %cst_164 = arith.constant 2.500000e-01 : f32
    %267 = vector.broadcast %cst_164 : f32 to vector<2x8x8xf32>
    %268 = arith.mulf %266, %267 : vector<2x8x8xf32>
    %269 = arith.addf %268, %32 : vector<2x8x8xf32>
    %cst_165 = arith.constant dense<0xFF800000> : vector<2x8xf32>
    %270 = vector.multi_reduction <maximumf>, %269, %cst_165 [2] : vector<2x8x8xf32> to vector<2x8xf32>
    %271 = vector.shape_cast %270 : vector<2x8xf32> to vector<2x8x1xf32>
    %272 = vector.broadcast %271 : vector<2x8x1xf32> to vector<2x8x8xf32>
    %273 = arith.subf %269, %272 : vector<2x8x8xf32>
    %274 = math.exp %273 : vector<2x8x8xf32>
    %cst_166 = arith.constant dense<0.000000e+00> : vector<2x8xf32>
    %275 = vector.multi_reduction <add>, %274, %cst_166 [2] : vector<2x8x8xf32> to vector<2x8xf32>
    %276 = vector.shape_cast %275 : vector<2x8xf32> to vector<2x8x1xf32>
    %277 = vector.broadcast %276 : vector<2x8x1xf32> to vector<2x8x8xf32>
    %278 = arith.divf %274, %277 : vector<2x8x8xf32>
    %279 = arith.truncf %278 : vector<2x8x8xf32> to vector<2x8x8xbf16>
    %280 = arith.truncf %263 : vector<2x8x16xf32> to vector<2x8x16xbf16>
    "tpu.trace_start"() <{level = 10 : i32, message = "bqk,bkd->bqd"}> : () -> ()
    %cst_167 = arith.constant dense<0.000000e+00> : vector<2x8x16xf32>
    %281 = tpu.matmul %279, %280, %cst_167 {dimension_numbers = #tpu.dot_dimension_numbers<[2], [1], [1], [2], [0, 0, 0, 1, 1, 2], [0], [0]>} : vector<2x8x8xbf16>, vector<2x8x16xbf16>, vector<2x8x16xf32> -> vector<2x8x16xf32>
    "tpu.trace_stop"() : () -> ()
    %282 = vector.shape_cast %281 : vector<2x8x16xf32> to vector<16x16xf32>
    %c1_168 = arith.constant 1 : index
    %c1_169 = arith.constant 1 : index
    %c0_170 = arith.constant 0 : index
    %c0_171 = arith.constant 0 : index
    %283 = vector.load %arg4[%c1_168, %c1_169, %c0_170, %c0_171] : memref<2x2x32x16xbf16, #tpu.memory_space<vmem>>, vector<1x1x32x16xbf16>
    %284 = vector.shape_cast %283 : vector<1x1x32x16xbf16> to vector<32x16xbf16>
    %cst_172 = arith.constant dense<0.000000e+00> : vector<16x16xf32>
    %285 = tpu.matmul %239, %284, %cst_172 {dimension_numbers = #tpu.dot_dimension_numbers<[1], [0], [0], [1], [0, 0, 1, 1], [], []>} : vector<16x32xbf16>, vector<32x16xbf16>, vector<16x16xf32> -> vector<16x16xf32>
    %c1_173 = arith.constant 1 : index
    %c1_174 = arith.constant 1 : index
    %c0_175 = arith.constant 0 : index
    %c0_176 = arith.constant 0 : index
    %286 = vector.load %arg7[%c1_173, %c1_174, %c0_175, %c0_176] : memref<2x2x1x16xf32, #tpu.memory_space<vmem>>, vector<1x1x1x16xf32>
    %287 = vector.shape_cast %286 : vector<1x1x1x16xf32> to vector<1x16xf32>
    %288 = vector.broadcast %287 : vector<1x16xf32> to vector<16x16xf32>
    %289 = arith.addf %285, %288 : vector<16x16xf32>
    %c1_177 = arith.constant 1 : index
    %c1_178 = arith.constant 1 : index
    %c0_179 = arith.constant 0 : index
    %c0_180 = arith.constant 0 : index
    %290 = vector.load %arg5[%c1_177, %c1_178, %c0_179, %c0_180] : memref<2x2x32x16xbf16, #tpu.memory_space<vmem>>, vector<1x1x32x16xbf16>
    %291 = vector.shape_cast %290 : vector<1x1x32x16xbf16> to vector<32x16xbf16>
    %cst_181 = arith.constant dense<0.000000e+00> : vector<16x16xf32>
    %292 = tpu.matmul %239, %291, %cst_181 {dimension_numbers = #tpu.dot_dimension_numbers<[1], [0], [0], [1], [0, 0, 1, 1], [], []>} : vector<16x32xbf16>, vector<32x16xbf16>, vector<16x16xf32> -> vector<16x16xf32>
    %c1_182 = arith.constant 1 : index
    %c1_183 = arith.constant 1 : index
    %c0_184 = arith.constant 0 : index
    %c0_185 = arith.constant 0 : index
    %293 = vector.load %arg8[%c1_182, %c1_183, %c0_184, %c0_185] : memref<2x2x1x16xf32, #tpu.memory_space<vmem>>, vector<1x1x1x16xf32>
    %294 = vector.shape_cast %293 : vector<1x1x1x16xf32> to vector<1x16xf32>
    %295 = vector.broadcast %294 : vector<1x16xf32> to vector<16x16xf32>
    %296 = arith.addf %292, %295 : vector<16x16xf32>
    %c1_186 = arith.constant 1 : index
    %c1_187 = arith.constant 1 : index
    %c0_188 = arith.constant 0 : index
    %c0_189 = arith.constant 0 : index
    %297 = vector.load %arg6[%c1_186, %c1_187, %c0_188, %c0_189] : memref<2x2x32x16xbf16, #tpu.memory_space<vmem>>, vector<1x1x32x16xbf16>
    %298 = vector.shape_cast %297 : vector<1x1x32x16xbf16> to vector<32x16xbf16>
    %cst_190 = arith.constant dense<0.000000e+00> : vector<16x16xf32>
    %299 = tpu.matmul %239, %298, %cst_190 {dimension_numbers = #tpu.dot_dimension_numbers<[1], [0], [0], [1], [0, 0, 1, 1], [], []>} : vector<16x32xbf16>, vector<32x16xbf16>, vector<16x16xf32> -> vector<16x16xf32>
    %c1_191 = arith.constant 1 : index
    %c1_192 = arith.constant 1 : index
    %c0_193 = arith.constant 0 : index
    %c0_194 = arith.constant 0 : index
    %300 = vector.load %arg9[%c1_191, %c1_192, %c0_193, %c0_194] : memref<2x2x1x16xf32, #tpu.memory_space<vmem>>, vector<1x1x1x16xf32>
    %301 = vector.shape_cast %300 : vector<1x1x1x16xf32> to vector<1x16xf32>
    %302 = vector.broadcast %301 : vector<1x16xf32> to vector<16x16xf32>
    %303 = arith.addf %299, %302 : vector<16x16xf32>
    %304 = vector.shape_cast %289 : vector<16x16xf32> to vector<2x8x16xf32>
    %305 = vector.shape_cast %296 : vector<16x16xf32> to vector<2x8x16xf32>
    %306 = vector.shape_cast %303 : vector<16x16xf32> to vector<2x8x16xf32>
    %307 = arith.truncf %304 : vector<2x8x16xf32> to vector<2x8x16xbf16>
    %308 = arith.truncf %305 : vector<2x8x16xf32> to vector<2x8x16xbf16>
    "tpu.trace_start"() <{level = 10 : i32, message = "bqd,bkd->bqk"}> : () -> ()
    %cst_195 = arith.constant dense<0.000000e+00> : vector<2x8x8xf32>
    %309 = tpu.matmul %307, %308, %cst_195 {dimension_numbers = #tpu.dot_dimension_numbers<[2], [2], [1], [1], [0, 0, 0, 1, 1, 1], [0], [0]>} : vector<2x8x16xbf16>, vector<2x8x16xbf16>, vector<2x8x8xf32> -> vector<2x8x8xf32>
    "tpu.trace_stop"() : () -> ()
    %cst_196 = arith.constant 2.500000e-01 : f32
    %310 = vector.broadcast %cst_196 : f32 to vector<2x8x8xf32>
    %311 = arith.mulf %309, %310 : vector<2x8x8xf32>
    %312 = arith.addf %311, %32 : vector<2x8x8xf32>
    %cst_197 = arith.constant dense<0xFF800000> : vector<2x8xf32>
    %313 = vector.multi_reduction <maximumf>, %312, %cst_197 [2] : vector<2x8x8xf32> to vector<2x8xf32>
    %314 = vector.shape_cast %313 : vector<2x8xf32> to vector<2x8x1xf32>
    %315 = vector.broadcast %314 : vector<2x8x1xf32> to vector<2x8x8xf32>
    %316 = arith.subf %312, %315 : vector<2x8x8xf32>
    %317 = math.exp %316 : vector<2x8x8xf32>
    %cst_198 = arith.constant dense<0.000000e+00> : vector<2x8xf32>
    %318 = vector.multi_reduction <add>, %317, %cst_198 [2] : vector<2x8x8xf32> to vector<2x8xf32>
    %319 = vector.shape_cast %318 : vector<2x8xf32> to vector<2x8x1xf32>
    %320 = vector.broadcast %319 : vector<2x8x1xf32> to vector<2x8x8xf32>
    %321 = arith.divf %317, %320 : vector<2x8x8xf32>
    %322 = arith.truncf %321 : vector<2x8x8xf32> to vector<2x8x8xbf16>
    %323 = arith.truncf %306 : vector<2x8x16xf32> to vector<2x8x16xbf16>
    "tpu.trace_start"() <{level = 10 : i32, message = "bqk,bkd->bqd"}> : () -> ()
    %cst_199 = arith.constant dense<0.000000e+00> : vector<2x8x16xf32>
    %324 = tpu.matmul %322, %323, %cst_199 {dimension_numbers = #tpu.dot_dimension_numbers<[2], [1], [1], [2], [0, 0, 0, 1, 1, 2], [0], [0]>} : vector<2x8x8xbf16>, vector<2x8x16xbf16>, vector<2x8x16xf32> -> vector<2x8x16xf32>
    "tpu.trace_stop"() : () -> ()
    %325 = vector.shape_cast %324 : vector<2x8x16xf32> to vector<16x16xf32>
    %326 = tpu.concatenate %282, %325 in 1 : vector<16x16xf32>, vector<16x16xf32> -> vector<16x32xf32>
    %327 = arith.truncf %326 : vector<16x32xf32> to vector<16x32xbf16>
    %c1_200 = arith.constant 1 : index
    %c0_201 = arith.constant 0 : index
    %c0_202 = arith.constant 0 : index
    %328 = vector.load %arg10[%c1_200, %c0_201, %c0_202] : memref<2x32x32xbf16, #tpu.memory_space<vmem>>, vector<1x32x32xbf16>
    %329 = vector.shape_cast %328 : vector<1x32x32xbf16> to vector<32x32xbf16>
    %cst_203 = arith.constant dense<0.000000e+00> : vector<16x32xf32>
    %330 = tpu.matmul %327, %329, %cst_203 {dimension_numbers = #tpu.dot_dimension_numbers<[1], [0], [0], [1], [0, 0, 1, 1], [], []>} : vector<16x32xbf16>, vector<32x32xbf16>, vector<16x32xf32> -> vector<16x32xf32>
    %c1_204 = arith.constant 1 : index
    %c0_205 = arith.constant 0 : index
    %c0_206 = arith.constant 0 : index
    %331 = vector.load %arg11[%c1_204, %c0_205, %c0_206] : memref<2x1x32xf32, #tpu.memory_space<vmem>>, vector<1x1x32xf32>
    %332 = vector.shape_cast %331 : vector<1x1x32xf32> to vector<1x32xf32>
    %333 = vector.broadcast %332 : vector<1x32xf32> to vector<16x32xf32>
    %334 = arith.addf %330, %333 : vector<16x32xf32>
    %335 = arith.addf %238, %334 : vector<16x32xf32>
    %c1_207 = arith.constant 1 : index
    %c0_208 = arith.constant 0 : index
    %c0_209 = arith.constant 0 : index
    %336 = vector.load %arg12[%c1_207, %c0_208, %c0_209] : memref<2x1x32xf32, #tpu.memory_space<vmem>>, vector<1x1x32xf32>
    %337 = vector.shape_cast %336 : vector<1x1x32xf32> to vector<1x32xf32>
    %c1_210 = arith.constant 1 : index
    %c0_211 = arith.constant 0 : index
    %c0_212 = arith.constant 0 : index
    %338 = vector.load %arg13[%c1_210, %c0_211, %c0_212] : memref<2x1x32xf32, #tpu.memory_space<vmem>>, vector<1x1x32xf32>
    %339 = vector.shape_cast %338 : vector<1x1x32xf32> to vector<1x32xf32>
    %cst_213 = arith.constant dense<0.000000e+00> : vector<16xf32>
    %340 = vector.multi_reduction <add>, %335, %cst_213 [1] : vector<16x32xf32> to vector<16xf32>
    %341 = vector.shape_cast %340 : vector<16xf32> to vector<16x1xf32>
    %cst_214 = arith.constant 3.200000e+01 : f32
    %342 = vector.broadcast %cst_214 : f32 to vector<16x1xf32>
    %343 = arith.divf %341, %342 : vector<16x1xf32>
    %344 = vector.broadcast %343 : vector<16x1xf32> to vector<16x32xf32>
    %345 = arith.subf %335, %344 : vector<16x32xf32>
    %346 = arith.mulf %345, %345 : vector<16x32xf32>
    %cst_215 = arith.constant dense<0.000000e+00> : vector<16xf32>
    %347 = vector.multi_reduction <add>, %346, %cst_215 [1] : vector<16x32xf32> to vector<16xf32>
    %348 = vector.shape_cast %347 : vector<16xf32> to vector<16x1xf32>
    %cst_216 = arith.constant 3.200000e+01 : f32
    %349 = vector.broadcast %cst_216 : f32 to vector<16x1xf32>
    %350 = arith.divf %348, %349 : vector<16x1xf32>
    %351 = vector.broadcast %343 : vector<16x1xf32> to vector<16x32xf32>
    %352 = arith.subf %335, %351 : vector<16x32xf32>
    %cst_217 = arith.constant 1.000000e-07 : f32
    %353 = vector.broadcast %cst_217 : f32 to vector<16x1xf32>
    %354 = arith.addf %350, %353 : vector<16x1xf32>
    %355 = math.rsqrt %354 : vector<16x1xf32>
    %356 = vector.broadcast %355 : vector<16x1xf32> to vector<16x32xf32>
    %357 = arith.mulf %352, %356 : vector<16x32xf32>
    %358 = vector.broadcast %337 : vector<1x32xf32> to vector<16x32xf32>
    %359 = arith.mulf %357, %358 : vector<16x32xf32>
    %360 = vector.broadcast %339 : vector<1x32xf32> to vector<16x32xf32>
    %361 = arith.addf %359, %360 : vector<16x32xf32>
    %362 = arith.truncf %361 : vector<16x32xf32> to vector<16x32xbf16>
    %c1_218 = arith.constant 1 : index
    %c0_219 = arith.constant 0 : index
    %c0_220 = arith.constant 0 : index
    %363 = vector.load %arg14[%c1_218, %c0_219, %c0_220] : memref<2x32x64xbf16, #tpu.memory_space<vmem>>, vector<1x32x64xbf16>
    %364 = vector.shape_cast %363 : vector<1x32x64xbf16> to vector<32x64xbf16>
    %cst_221 = arith.constant dense<0.000000e+00> : vector<16x64xf32>
    %365 = tpu.matmul %362, %364, %cst_221 {dimension_numbers = #tpu.dot_dimension_numbers<[1], [0], [0], [1], [0, 0, 1, 1], [], []>} : vector<16x32xbf16>, vector<32x64xbf16>, vector<16x64xf32> -> vector<16x64xf32>
    %c1_222 = arith.constant 1 : index
    %c0_223 = arith.constant 0 : index
    %c0_224 = arith.constant 0 : index
    %366 = vector.load %arg15[%c1_222, %c0_223, %c0_224] : memref<2x1x64xf32, #tpu.memory_space<vmem>>, vector<1x1x64xf32>
    %367 = vector.shape_cast %366 : vector<1x1x64xf32> to vector<1x64xf32>
    %368 = vector.broadcast %367 : vector<1x64xf32> to vector<16x64xf32>
    %369 = arith.addf %365, %368 : vector<16x64xf32>
    %cst_225 = arith.constant 5.000000e-01 : f32
    %370 = vector.broadcast %cst_225 : f32 to vector<16x64xf32>
    %371 = arith.mulf %370, %369 : vector<16x64xf32>
    %cst_226 = arith.constant 0.707106769 : f32
    %372 = vector.broadcast %cst_226 : f32 to vector<16x64xf32>
    %373 = arith.mulf %369, %372 : vector<16x64xf32>
    %cst_227 = arith.constant 0.000000e+00 : f32
    %374 = vector.broadcast %cst_227 : f32 to vector<16x64xf32>
    %375 = arith.cmpf oge, %373, %374 : vector<16x64xf32>
    %cst_228 = arith.constant 1.000000e+00 : f32
    %cst_229 = arith.constant -1.000000e+00 : f32
    %376 = vector.broadcast %cst_228 : f32 to vector<16x64xf32>
    %377 = vector.broadcast %cst_229 : f32 to vector<16x64xf32>
    %378 = arith.select %375, %376, %377 : vector<16x64xi1>, vector<16x64xf32>
    %379 = math.absf %373 : vector<16x64xf32>
    %cst_230 = arith.constant 0.327591091 : f32
    %380 = vector.broadcast %cst_230 : f32 to vector<16x64xf32>
    %381 = arith.mulf %380, %379 : vector<16x64xf32>
    %cst_231 = arith.constant 1.000000e+00 : f32
    %382 = vector.broadcast %cst_231 : f32 to vector<16x64xf32>
    %383 = arith.addf %382, %381 : vector<16x64xf32>
    %384 = tpu.reciprocal %383 {approx = true} : vector<16x64xf32> -> vector<16x64xf32>
    %cst_232 = arith.constant 1.06140542 : f32
    %385 = vector.broadcast %cst_232 : f32 to vector<16x64xf32>
    %386 = arith.mulf %385, %384 : vector<16x64xf32>
    %cst_233 = arith.constant -1.45315206 : f32
    %387 = vector.broadcast %cst_233 : f32 to vector<16x64xf32>
    %388 = arith.addf %386, %387 : vector<16x64xf32>
    %389 = arith.mulf %388, %384 : vector<16x64xf32>
    %cst_234 = arith.constant 1.42141378 : f32
    %390 = vector.broadcast %cst_234 : f32 to vector<16x64xf32>
    %391 = arith.addf %389, %390 : vector<16x64xf32>
    %392 = arith.mulf %391, %384 : vector<16x64xf32>
    %cst_235 = arith.constant -0.284496725 : f32
    %393 = vector.broadcast %cst_235 : f32 to vector<16x64xf32>
    %394 = arith.addf %392, %393 : vector<16x64xf32>
    %395 = arith.mulf %394, %384 : vector<16x64xf32>
    %cst_236 = arith.constant 0.254829586 : f32
    %396 = vector.broadcast %cst_236 : f32 to vector<16x64xf32>
    %397 = arith.addf %395, %396 : vector<16x64xf32>
    %398 = arith.mulf %397, %384 : vector<16x64xf32>
    %399 = arith.mulf %379, %379 : vector<16x64xf32>
    %cst_237 = arith.constant 0.000000e+00 : f32
    %400 = vector.broadcast %cst_237 : f32 to vector<16x64xf32>
    %401 = arith.subf %400, %399 : vector<16x64xf32>
    %402 = math.exp %401 : vector<16x64xf32>
    %403 = arith.mulf %398, %402 : vector<16x64xf32>
    %cst_238 = arith.constant 1.000000e+00 : f32
    %404 = vector.broadcast %cst_238 : f32 to vector<16x64xf32>
    %405 = arith.subf %404, %403 : vector<16x64xf32>
    %406 = arith.mulf %378, %405 : vector<16x64xf32>
    %cst_239 = arith.constant 1.000000e+00 : f32
    %407 = vector.broadcast %cst_239 : f32 to vector<16x64xf32>
    %408 = arith.addf %407, %406 : vector<16x64xf32>
    %409 = arith.mulf %371, %408 : vector<16x64xf32>
    %410 = arith.truncf %409 : vector<16x64xf32> to vector<16x64xbf16>
    %c1_240 = arith.constant 1 : index
    %c0_241 = arith.constant 0 : index
    %c0_242 = arith.constant 0 : index
    %411 = vector.load %arg16[%c1_240, %c0_241, %c0_242] : memref<2x64x32xbf16, #tpu.memory_space<vmem>>, vector<1x64x32xbf16>
    %412 = vector.shape_cast %411 : vector<1x64x32xbf16> to vector<64x32xbf16>
    %cst_243 = arith.constant dense<0.000000e+00> : vector<16x32xf32>
    %413 = tpu.matmul %410, %412, %cst_243 {dimension_numbers = #tpu.dot_dimension_numbers<[1], [0], [0], [1], [0, 0, 1, 1], [], []>} : vector<16x64xbf16>, vector<64x32xbf16>, vector<16x32xf32> -> vector<16x32xf32>
    %c1_244 = arith.constant 1 : index
    %c0_245 = arith.constant 0 : index
    %c0_246 = arith.constant 0 : index
    %414 = vector.load %arg17[%c1_244, %c0_245, %c0_246] : memref<2x1x32xf32, #tpu.memory_space<vmem>>, vector<1x1x32xf32>
    %415 = vector.shape_cast %414 : vector<1x1x32xf32> to vector<1x32xf32>
    %416 = vector.broadcast %415 : vector<1x32xf32> to vector<16x32xf32>
    %417 = arith.addf %413, %416 : vector<16x32xf32>
    %418 = arith.addf %361, %417 : vector<16x32xf32>
    %c1_247 = arith.constant 1 : index
    %c0_248 = arith.constant 0 : index
    %c0_249 = arith.constant 0 : index
    %419 = vector.load %arg18[%c1_247, %c0_248, %c0_249] : memref<2x1x32xf32, #tpu.memory_space<vmem>>, vector<1x1x32xf32>
    %420 = vector.shape_cast %419 : vector<1x1x32xf32> to vector<1x32xf32>
    %c1_250 = arith.constant 1 : index
    %c0_251 = arith.constant 0 : index
    %c0_252 = arith.constant 0 : index
    %421 = vector.load %arg19[%c1_250, %c0_251, %c0_252] : memref<2x1x32xf32, #tpu.memory_space<vmem>>, vector<1x1x32xf32>
    %422 = vector.shape_cast %421 : vector<1x1x32xf32> to vector<1x32xf32>
    %cst_253 = arith.constant dense<0.000000e+00> : vector<16xf32>
    %423 = vector.multi_reduction <add>, %418, %cst_253 [1] : vector<16x32xf32> to vector<16xf32>
    %424 = vector.shape_cast %423 : vector<16xf32> to vector<16x1xf32>
    %cst_254 = arith.constant 3.200000e+01 : f32
    %425 = vector.broadcast %cst_254 : f32 to vector<16x1xf32>
    %426 = arith.divf %424, %425 : vector<16x1xf32>
    %427 = vector.broadcast %426 : vector<16x1xf32> to vector<16x32xf32>
    %428 = arith.subf %418, %427 : vector<16x32xf32>
    %429 = arith.mulf %428, %428 : vector<16x32xf32>
    %cst_255 = arith.constant dense<0.000000e+00> : vector<16xf32>
    %430 = vector.multi_reduction <add>, %429, %cst_255 [1] : vector<16x32xf32> to vector<16xf32>
    %431 = vector.shape_cast %430 : vector<16xf32> to vector<16x1xf32>
    %cst_256 = arith.constant 3.200000e+01 : f32
    %432 = vector.broadcast %cst_256 : f32 to vector<16x1xf32>
    %433 = arith.divf %431, %432 : vector<16x1xf32>
    %434 = vector.broadcast %426 : vector<16x1xf32> to vector<16x32xf32>
    %435 = arith.subf %418, %434 : vector<16x32xf32>
    %cst_257 = arith.constant 1.000000e-07 : f32
    %436 = vector.broadcast %cst_257 : f32 to vector<16x1xf32>
    %437 = arith.addf %433, %436 : vector<16x1xf32>
    %438 = math.rsqrt %437 : vector<16x1xf32>
    %439 = vector.broadcast %438 : vector<16x1xf32> to vector<16x32xf32>
    %440 = arith.mulf %435, %439 : vector<16x32xf32>
    %441 = vector.broadcast %420 : vector<1x32xf32> to vector<16x32xf32>
    %442 = arith.mulf %440, %441 : vector<16x32xf32>
    %443 = vector.broadcast %422 : vector<1x32xf32> to vector<16x32xf32>
    %444 = arith.addf %442, %443 : vector<16x32xf32>
    %c0_258 = arith.constant 0 : index
    %c0_259 = arith.constant 0 : index
    %445 = vector.load %arg22[%c0_258, %c0_259] : memref<16x32xf32, #tpu.memory_space<vmem>>, vector<16x32xf32>
    tpu.vector_store %arg22[%c0_258, %c0_259], %444 {strides = array<i32>} : memref<16x32xf32, #tpu.memory_space<vmem>>, vector<16x32xf32>,
    %446 = vector.shape_cast %444 : vector<16x32xf32> to vector<2x8x32xf32>
    %447 = vector.extract_strided_slice %446 {offsets = [0, 0, 0], sizes = [2, 1, 32], strides = [1, 1, 1]} : vector<2x8x32xf32> to vector<2x1x32xf32>
    %448 = vector.shape_cast %447 : vector<2x1x32xf32> to vector<2x32xf32>
    %449 = arith.truncf %448 : vector<2x32xf32> to vector<2x32xbf16>
    %c0_260 = arith.constant 0 : index
    %c0_261 = arith.constant 0 : index
    %450 = vector.load %arg20[%c0_260, %c0_261] : memref<32x128xbf16, #tpu.memory_space<vmem>>, vector<32x128xbf16>
    %cst_262 = arith.constant dense<0.000000e+00> : vector<2x128xf32>
    %451 = tpu.matmul %449, %450, %cst_262 {dimension_numbers = #tpu.dot_dimension_numbers<[1], [0], [0], [1], [0, 0, 1, 1], [], []>} : vector<2x32xbf16>, vector<32x128xbf16>, vector<2x128xf32> -> vector<2x128xf32>
    %c0_263 = arith.constant 0 : index
    %c0_264 = arith.constant 0 : index
    %452 = vector.load %arg21[%c0_263, %c0_264] : memref<1x128xf32, #tpu.memory_space<vmem>>, vector<1x128xf32>
    %453 = vector.broadcast %452 : vector<1x128xf32> to vector<2x128xf32>
    %454 = arith.addf %451, %453 : vector<2x128xf32>
    %c0_265 = arith.constant 0 : index
    %c0_266 = arith.constant 0 : index
    %455 = vector.load %arg23[%c0_265, %c0_266] : memref<2x128xf32, #tpu.memory_space<vmem>>, vector<2x128xf32>
    tpu.vector_store %arg23[%c0_265, %c0_266], %454 {strides = array<i32>} : memref<2x128xf32, #tpu.memory_space<vmem>>, vector<2x128xf32>,
    return
  }
}

</mosaic_0001>

<bundles_post_ra>
// kernel: _forward_impl.1
= control target key start
LH: loop header
LB: loop body
LE: loop exit
PB: predicated region body
PF: predicated region fallthrough
CT: control target
= control target key end

     0   :  { %s4054_s0 = inlined_call_operand.vmem [shape: f32[2,8,32], index: 0, kind: input, shape index: {}]   ;;  %s4055_s1 = inlined_call_operand.vmem [shape: f32[2,1,8], index: 1, kind: input, shape index: {}]   ;;  %s4056_s2 = inlined_call_operand.vmem [shape: f32[1,32], index: 2, kind: input, shape index: {}]   ;;  %s4057_s3 = inlined_call_operand.vmem [shape: f32[1,32], index: 3, kind: input, shape index: {}]   ;;  %s4058_s4 = inlined_call_operand.vmem [shape: bf16[2,2,32,16], index: 4, kind: input, shape index: {}]   ;;  %s4059_s5 = inlined_call_operand.vmem [shape: bf16[2,2,32,16], index: 5, kind: input, shape index: {}]   ;;  %s4060_s6 = inlined_call_operand.vmem [shape: bf16[2,2,32,16], index: 6, kind: input, shape index: {}]   ;;  %s4061_s7 = inlined_call_operand.vmem [shape: f32[2,2,1,16], index: 7, kind: input, shape index: {}]   ;;  %s4062_s8 = inlined_call_operand.vmem [shape: f32[2,2,1,16], index: 8, kind: input, shape index: {}]   ;;  %s4063_s9 = inlined_call_operand.vmem [shape: f32[2,2,1,16], index: 9, kind: input, shape index: {}]   ;;  %s4064_s10 = inlined_call_operand.vmem [shape: bf16[2,32,32], index: 10, kind: input, shape index: {}]   ;;  %s4065_s11 = inlined_call_operand.vmem [shape: f32[2,1,32], index: 11, kind: input, shape index: {}]   ;;  %s4066_s12 = inlined_call_operand.vmem [shape: f32[2,1,32], index: 12, kind: input, shape index: {}]   ;;  %s4067_s13 = inlined_call_operand.vmem [shape: f32[2,1,32], index: 13, kind: input, shape index: {}]   ;;  %s4068_s14 = inlined_call_operand.vmem [shape: bf16[2,32,64], index: 14, kind: input, shape index: {}]   ;;  %s4069_s15 = inlined_call_operand.vmem [shape: f32[2,1,64], index: 15, kind: input, shape index: {}]   ;;  %s4070_s16 = inlined_call_operand.vmem [shape: bf16[2,64,32], index: 16, kind: input, shape index: {}]   ;;  %s4071_s17 = inlined_call_operand.vmem [shape: f32[2,1,32], index: 17, kind: input, shape index: {}]   ;;  %s4072_s18 = inlined_call_operand.vmem [shape: f32[2,1,32], index: 18, kind: input, shape index: {}]   ;;  %s4073_s19 = inlined_call_operand.vmem [shape: f32[2,1,32], index: 19, kind: input, shape index: {}]   ;;  %s4074_s20 = inlined_call_operand.vmem [shape: bf16[32,128], index: 20, kind: input, shape index: {}]   ;;  %s4075_s21 = inlined_call_operand.vmem [shape: f32[1,128], index: 21, kind: input, shape index: {}]   ;;  %s4076_s22 = inlined_call_operand.hbm [shape: f32[16,32], index: 22, kind: output, shape index: {0}]   ;;  %s4077_s23 = inlined_call_operand.hbm [shape: f32[2,128], index: 23, kind: output, shape index: {1}]  }
   0x1   :  { %4084 = sst [smem:[#allocation8_spill]] %s4054_s0 }
   0x2   :  { %4085 = sst [smem:[#allocation9_spill]] %s4055_s1 }
   0x3   :  { %4086 = sst [smem:[#allocation10_spill]] %s4056_s2 }
   0x4   :  { %4087 = sst [smem:[#allocation11_spill]] %s4057_s3 }
   0x5   :  { %4088 = sst [smem:[#allocation12_spill]] %s4058_s4 }
   0x6   :  { %4089 = sst [smem:[#allocation13_spill]] %s4059_s5 }
   0x7   :  { %4090 = sst [smem:[#allocation14_spill]] %s4060_s6 }
   0x8   :  { %4091 = sst [smem:[#allocation15_spill]] %s4061_s7 }
   0x9   :  { %29 = vsyncpa [#allocation3], 0  ;;  %s4092_s24 = sld [smem:[#allocation8_spill]]  ;;  %vm80_vm0 = vcmask 261120  }
   0xf   :  { %v76_v0 = vld [vmem:[%s4092_s24] sm:$0xff]  ;;  %v77_v1 = vld [vmem:[%s4092_s24 + $0x8] sm:$0xff] }
  0x10   :  { %v81_v2 = vsel %vm80_vm0, %v76_v0, 0.0  ;;  %v84_v3 = vsel %vm80_vm0, %v77_v1, 0.0 }
  0x11   :  { %82 = vadd.xlane.f32.xlu0 %v81_v2 }
  0x15   :  { %85 = vadd.xlane.f32.xlu0 %v84_v3 }
  0x16   :  { %30 = vsyncpa [#allocation5], 0  ;;  %s4093_s2 = sld [smem:[#allocation12_spill]]  ;;  %s4094_s7 = sld [smem:[#allocation13_spill]]  ;;  %v3378_v16 = vmov 0.0   ;;  %vm3379_vm1 = vmmov 0  }
  0x17   :  { %2946 = vmatprep.subr.bf16.mxu0 %v3378_v16  ;;  %2954 = vmatprep.subr.bf16.mxu1 %v3378_v16  ;;  %s4095_s24 = sld [smem:[#allocation10_spill]]  ;;  %s4096_s1 = sld [smem:[#allocation11_spill]]  ;;  %v2685_v38 = vld [vmem:[%s4062_s8] ss:$0 sm:$0xff]  ;;  %vm342_vm2 = vcmask 130048   ;;  %vm469_vm3 = vcmask 1043456  }
  0x18   :  { %2950 = vmatprep.mubr.msk.bf16.mxu0 %vm3379_vm1, %v3378_v16  ;;  %2958 = vmatprep.mubr.msk.bf16.mxu1 %vm3379_vm1, %v3378_v16  ;;  %s4097_s27 = sld [smem:[#allocation14_spill]]  ;;  %v2689_v53 = vld [vmem:[%s4063_s9] ss:$0 sm:$0xff]  ;;  %s4099_s6 = sld [smem:[#allocation9_spill]]  ;;  %vm439_vm4 = vcmask 64512   ;;  %vm1259_vm7 = vcmask 523264  }
  0x19   :  { %s3380_s3 = smov 16   ;;  %vm2590_vm10 = vcmask 1041409  }
  0x1c   :  { %v3220_v14 = vld [vmem:[%s4093_s2] sm:$0xff]   ;;  %v3222_v17 = vld [vmem:[%s4093_s2 + $0x8] sm:$0xff]  }
  0x1d   :  { %v3221_v15 = vld [vmem:[%s4094_s7] sm:$0xff]   ;;  %2947 = vmatpush3.bf16.msra.mxu0 %v3220_v14  ;;  %v3223_v18 = vld [vmem:[%s4094_s7 + $0x8] sm:$0xff]  }
  0x1e   :  { %2955 = vmatpush3.bf16.msra.mxu1 %v3221_v15  ;;  %2948 = vmatprep.subr.bf16.mxu0 %v3378_v16  ;;  %v2679_v27 = vld [vmem:[%s4095_s24] ss:$0 sm:$0xff]  ;;  %v3225_v37 = vld [vmem:[%s4097_s27 + $0x8] sm:$0xff]   ;;  %s4098_s24 = sld [smem:[#allocation15_spill]] }
  0x1f   :  { %2956 = vmatprep.subr.bf16.mxu1 %v3378_v16  ;;  %v2680_v31 = vld [vmem:[%s4096_s1] ss:$0 sm:$0xff] }
  0x20   :  { %v3224_v35 = vld [vmem:[%s4097_s27] sm:$0xff]  }
  0x21   :  { %2949 = vmatpush3.bf16.msra.mxu0 %v3222_v17 }
  0x22   :  { %2957 = vmatpush3.bf16.msra.mxu1 %v3223_v18  ;;  %2962 = vmatprep.subr.bf16.mxu0 %v3378_v16 }
  0x23   :  { %2970 = vmatprep.subr.bf16.mxu1 %v3378_v16 }
  0x24   :  { %v2681_v50 = vld [vmem:[%s4098_s24] ss:$0 sm:$0xff] }
  0x9e   :  { %v83_v4 = vpop.xlane.xlu0 %82 }
  0x9f   :  { %v88_v5 = vmul.f32 0.03125, %v83_v4 }
  0xa1   :  { %v90_v6 = vsub.f32 %v76_v0, %v88_v5  ;;  %v132_v5 = vlaneseq }
  0xa2   :  { %v86_v7 = vpop.xlane.xlu0 %85 }
  0xa3   :  { %v89_v8 = vmul.f32 0.03125, %v86_v7  ;;  %v92_v9 = vmul.f32 %v90_v6, %v90_v6  ;;  %v125_v7 = vld [vmem:[%s4099_s6 + $0x1] sm:$0x1] }
  0xa5   :  { %v91_v10 = vsub.f32 %v77_v1, %v89_v8  ;;  %v94_v11 = vsel %vm80_vm0, %v92_v9, 0.0  ;;  %v133_v9 = vshrl.u32 %v132_v5, 7 }
  0xa6   :  { %95 = vadd.xlane.f32.xlu1 %v94_v11 }
  0xa7   :  { %v93_v12 = vmul.f32 %v91_v10, %v91_v10 }
  0xa9   :  { %v97_v13 = vsel %vm80_vm0, %v93_v12, 0.0  ;;  %v134_v12 = vsub.s32 0, %v133_v9 }
  0xaa   :  { %98 = vadd.xlane.f32.xlu1 %v97_v13 }
 0x133   :  { %v96_v19 = vpop.xlane.xlu1 %95 }
 0x134   :  { %v100_v20 = vmul.f32 0.03125, %v96_v19 }
 0x136   :  { %v102_v21 = vadd.f32 1e-07, %v100_v20 }
 0x137   :  { %v99_v22 = vpop.xlane.xlu1 %98 }
 0x138   :  { %3262 = vrsqrt.f32 %v102_v21  ;;  %v101_v23 = vmul.f32 0.03125, %v99_v22 }
 0x13a   :  { %v103_v24 = vadd.f32 1e-07, %v101_v23 }
 0x13c   :  { %3264 = vrsqrt.f32 %v103_v24 }
 0x142   :  { %v3263_v25 = vpop.eup %3262 }
 0x143   :  { %v106_v26 = vmul.f32 %v3263_v25, %v90_v6  ;;  %v124_v6 = vld [vmem:[%s4099_s6] sm:$0x1] }
 0x144   :  { %v126_v8 = vsub.f32 1.0, %v124_v6 }
 0x145   :  { %v114_v29 = vmul.f32 %v2679_v27, %v106_v26 }
 0x146   :  { %v3265_v28 = vpop.eup %3264  ;;  %v128_v11 = vmul.f32 -1e+09, %v126_v8 }
 0x147   :  { %v107_v30 = vmul.f32 %v3265_v28, %v91_v10  ;;  %v3544_v33 = vadd.f32 %v2680_v31, %v114_v29  ;;  %v127_v10 = vsub.f32 1.0, %v125_v7 }
 0x148   :  { %v3601_v14 = vrot.slane %v128_v11, %v134_v12 }
 0x149   :  { %v115_v32 = vmul.f32 %v2679_v27, %v107_v30  ;;  %v129_v13 = vmul.f32 -1e+09, %v127_v10 }
 0x14b   :  { %v3546_v34 = vadd.f32 %v2680_v31, %v115_v32  ;;  %v3603_v19 = vrot.slane %v129_v13, %v134_v12  ;;  %v2702_v13 = vld [vmem:[%s4098_s24 + $0x1] ss:$0 sm:$0xff] }
 0x14d   :  { %v3553_v36 = vpack.c.bf16 %v3546_v34, %v3544_v33 }
 0x14f   :  { %2951 = vmatmul.mubr.msk.bf16.vlgmr.msra.gmra.mrb[0].mxu0 %vm80_vm0, %v3553_v36  ;;  %2959 = vmatmul.mubr.msk.bf16.vlgmr.msra.gmra.mrb[0].mxu1 %vm80_vm0, %v3553_v36 }
 0x150   :  { %2963 = vmatpush3.bf16.msra.mxu0 %v3224_v35  ;;  %2966 = vmatprep.mubr.msk.bf16.mxu0 %vm3379_vm1, %v3378_v16 }
 0x151   :  { %2964 = vmatprep.subr.bf16.mxu0 %v3378_v16  ;;  %2972 = vmatprep.mubr.msk.bf16.mxu1 %vm3379_vm1, %v3378_v16 }
 0x154   :  { %2965 = vmatpush3.bf16.msra.mxu0 %v3225_v37 }
 0x155   :  { %2976 = vmatprep.subr.bf16.mxu0 %v3378_v16 }
 0x157   :  { %2967 = vmatmul.mubr.msk.bf16.vlgmr.msra.gmra.mrb[4].mxu0 %vm80_vm0, %v3553_v36 }
 0x158   :  { %2978 = vmatprep.mubr.msk.bf16.mxu0 %vm3379_vm1, %v3378_v16 }
 0x222   :  { %v203_v39 = vpop.f32.mrb[0].mxu0  ;;  %v267_v40 = vpop.f32.mrb[0].mxu1 }
 0x223   :  { %v268_v41 = vadd.f32 %v2685_v38, %v267_v40  ;;  %v2952_v42 = vpop.f32.mrb[1].mxu0  ;;  %v2960_v43 = vpop.f32.mrb[1].mxu1  ;;  %v204_v54 = vadd.f32 %v2681_v50, %v203_v39 }
 0x224   :  { %v206_v44 = vpop.f32.mrb[2].mxu0  ;;  %v270_v45 = vpop.f32.mrb[2].mxu1 }
 0x225   :  { %v340_v46 = vpack.c.bf16 %v268_v41, %v268_v41  ;;  %v271_v47 = vadd.f32 %v2685_v38, %v270_v45  ;;  %v2953_v48 = vpop.f32.mrb[3].mxu0  ;;  %v2961_v49 = vpop.f32.mrb[3].mxu1  ;;  %v207_v57 = vadd.f32 %v2681_v50, %v206_v44  ;;  %v338_v61 = vpack.c.bf16 %v204_v54, %v204_v54  ;;  %v3228_v54 = vld [vmem:[%s4093_s2 + $0x18] sm:$0xff]  }
 0x226   :  { %v3226_v49 = vld [vmem:[%s4093_s2 + $0x10] sm:$0xff]  }
 0x227   :  { %v347_v51 = vsel %vm342_vm2, %v340_v46, 0  ;;  %v341_v52 = vpack.c.bf16 %v271_v47, %v271_v47  ;;  %v339_v1 = vpack.c.bf16 %v207_v57, %v207_v57  ;;  %v3231_v57 = vld [vmem:[%s4097_s27 + $0x18] sm:$0xff]  }
 0x228   :  { %2971 = vmatpush3.bf16.xpose.msra.mxu1 %v347_v51 }
 0x229   :  { %v393_v55 = vsel %vm342_vm2, %v341_v52, 0  ;;  %2982 = vmatprep.subr.bf16.mxu1 %v3378_v16  ;;  %v3227_v52 = vld [vmem:[%s4094_s7 + $0x10] sm:$0xff]  }
 0x22a   :  { %v331_v56 = vpop.f32.mrb[4].mxu0  ;;  %2977 = vmatpush3.bf16.xpose.msra.mxu0 %v393_v55  ;;  %v3229_v55 = vld [vmem:[%s4094_s7 + $0x18] sm:$0xff]  }
 0x22b   :  { %v332_v58 = vadd.f32 %v2689_v53, %v331_v56  ;;  %v2968_v59 = vpop.f32.mrb[5].mxu0  ;;  %2988 = vmatprep.subr.bf16.mxu0 %v3378_v16  ;;  %v3230_v56 = vld [vmem:[%s4097_s27 + $0x10] sm:$0xff]  }
 0x22c   :  { %v334_v60 = vpop.f32.mrb[6].mxu0 }
 0x22d   :  { %v464_v62 = vpack.c.bf16 %v332_v58, %v332_v58  ;;  %v335_v63 = vadd.f32 %v2689_v53, %v334_v60  ;;  %v2969_v0 = vpop.f32.mrb[7].mxu0 }
 0x22f   :  { %v471_v2 = vsel %vm469_vm3, %v464_v62, 0  ;;  %v465_v3 = vpack.c.bf16 %v335_v63, %v335_v63  ;;  %2973 = vmatmul.mubr.msk.bf16.vlgmr.msra.gmra.mrb[4].mxu1 %vm342_vm2, %v338_v61 }
 0x230   :  { %2983 = vmatpush3.bf16.msra.mxu1 %v471_v2  ;;  %2984 = vmatprep.mubr.msk.bf16.mxu1 %vm3379_vm1, %v3378_v16 }
 0x231   :  { %v517_v4 = vsel %vm469_vm3, %v465_v3, 0  ;;  %2979 = vmatmul.mubr.msk.bf16.vlgmr.msra.gmra.mrb[8].mxu0 %vm342_vm2, %v339_v1  ;;  %2994 = vmatprep.subr.bf16.mxu1 %v3378_v16  ;;  %v2711_v3 = vld [vmem:[%s4062_s8 + $0x1] ss:$0 sm:$0xff] }
 0x232   :  { %2989 = vmatpush3.bf16.msra.mxu0 %v517_v4  ;;  %2990 = vmatprep.mubr.msk.bf16.mxu0 %vm3379_vm1, %v3378_v16 }
 0x233   :  { %3002 = vmatprep.subr.bf16.mxu0 %v3378_v16 }
 0x302   :  { %v383_v15 = vpop.f32.mrb[4].mxu1 }
 0x303   :  { %v435_v17 = vmul.f32 0.25, %v383_v15  ;;  %v2974_v18 = vpop.f32.mrb[5].mxu1  ;;  %v2720_v15 = vld [vmem:[%s4063_s9 + $0x1] ss:$0 sm:$0xff] }
 0x304   :  { %v386_v20 = vpop.f32.mrb[6].mxu1  ;;  %v429_v21 = vpop.f32.mrb[8].mxu0 }
 0x305   :  { %v436_v22 = vmul.f32 0.25, %v429_v21  ;;  %v2975_v23 = vpop.f32.mrb[7].mxu1  ;;  %v2980_v24 = vpop.f32.mrb[9].mxu0  ;;  %v437_v25 = vadd.f32 %v435_v17, %v3601_v14 }
 0x306   :  { %v432_v26 = vpop.f32.mrb[10].mxu0 }
 0x307   :  { %v2981_v27 = vpop.f32.mrb[11].mxu0  ;;  %v440_v28 = vsel %vm439_vm4, %v437_v25, -inf  ;;  %v438_v29 = vadd.f32 %v436_v22, %v3603_v19 }
 0x308   :  { %441 = vmax.xlane.f32.xlu1 %v440_v28 }
 0x309   :  { %v443_v30 = vsel %vm439_vm4, %v438_v29, -inf }
 0x30a   :  { %444 = vmax.xlane.f32.xlu0 %v443_v30 }
 0x395   :  { %v442_v31 = vpop.xlane.xlu1 %441 }
 0x396   :  { %v446_v32 = vsub.f32 %v437_v25, %v442_v31 }
 0x397   :  { %v445_v35 = vpop.xlane.xlu0 %444 }
 0x398   :  { %v448_v37 = vmul.f32 1.442695, %v446_v32  ;;  %v447_v38 = vsub.f32 %v438_v29, %v445_v35 }
 0x39a   :  { %3266 = vpow2.f32 %v448_v37  ;;  %v450_v39 = vmul.f32 1.442695, %v447_v38 }
 0x39c   :  { %3268 = vpow2.f32 %v450_v39 }
 0x3a4   :  { %v3267_v40 = vpop.eup %3266 }
 0x3a5   :  { %v452_v41 = vsel %vm439_vm4, %v3267_v40, 0.0 }
 0x3a6   :  { %v3269_v42 = vpop.eup %3268  ;;  %453 = vadd.xlane.f32.xlu1 %v452_v41 }
 0x3a7   :  { %v455_v43 = vsel %vm439_vm4, %v3269_v42, 0.0 }
 0x3a8   :  { %456 = vadd.xlane.f32.xlu0 %v455_v43 }
 0x433   :  { %v454_v44 = vpop.xlane.xlu1 %453 }
 0x434   :  { %3270 = vrcp.f32 %v454_v44 }
 0x435   :  { %v457_v45 = vpop.xlane.xlu0 %456 }
 0x436   :  { %3272 = vrcp.f32 %v457_v45 }
 0x43e   :  { %v3271_v46 = vpop.eup %3270 }
 0x43f   :  { %v459_v47 = vmul.f32 %v3271_v46, %v3267_v40 }
 0x440   :  { %v3273_v48 = vpop.eup %3272 }
 0x441   :  { %v461_v50 = vmul.f32 %v3273_v48, %v3269_v42  ;;  %v462_v51 = vpack.c.bf16 %v459_v47, %v459_v47 }
 0x443   :  { %2985 = vmatmul.mubr.msk.bf16.vlgmr.msra.gmra.mrb[8].mxu1 %vm439_vm4, %v462_v51  ;;  %v463_v53 = vpack.c.bf16 %v461_v50, %v461_v50 }
 0x444   :  { %2995 = vmatpush3.bf16.msra.mxu1 %v3226_v49  ;;  %2998 = vmatprep.mubr.msk.bf16.mxu1 %vm3379_vm1, %v3378_v16 }
 0x445   :  { %2991 = vmatmul.mubr.msk.bf16.vlgmr.msra.gmra.mrb[12].mxu0 %vm439_vm4, %v463_v53  ;;  %2996 = vmatprep.subr.bf16.mxu1 %v3378_v16 }
 0x446   :  { %3003 = vmatpush3.bf16.msra.mxu0 %v3227_v52  ;;  %3006 = vmatprep.mubr.msk.bf16.mxu0 %vm3379_vm1, %v3378_v16 }
 0x447   :  { %3004 = vmatprep.subr.bf16.mxu0 %v3378_v16 }
 0x448   :  { %2997 = vmatpush3.bf16.msra.mxu1 %v3228_v54 }
 0x449   :  { %3010 = vmatprep.subr.bf16.mxu1 %v3378_v16 }
 0x44a   :  { %3005 = vmatpush3.bf16.msra.mxu0 %v3229_v55 }
 0x44b   :  { %2999 = vmatmul.mubr.msk.bf16.vlgmr.msra.gmra.mrb[12].mxu1 %vm80_vm0, %v3553_v36  ;;  %3018 = vmatprep.subr.bf16.mxu0 %v3378_v16 }
 0x44c   :  { %3011 = vmatpush3.bf16.msra.mxu1 %v3230_v56  ;;  %3014 = vmatprep.mubr.msk.bf16.mxu1 %vm3379_vm1, %v3378_v16 }
 0x44d   :  { %3007 = vmatmul.mubr.msk.bf16.vlgmr.msra.gmra.mrb[16].mxu0 %vm80_vm0, %v3553_v36  ;;  %3012 = vmatprep.subr.bf16.mxu1 %v3378_v16 }
 0x44e   :  { %3020 = vmatprep.mubr.msk.bf16.mxu0 %vm3379_vm1, %v3378_v16 }
 0x450   :  { %3013 = vmatpush3.bf16.msra.mxu1 %v3231_v57 }
 0x451   :  { %3024 = vmatprep.subr.bf16.mxu1 %v3378_v16 }
 0x453   :  { %3015 = vmatmul.mubr.msk.bf16.vlgmr.msra.gmra.mrb[16].mxu1 %vm80_vm0, %v3553_v36 }
 0x454   :  { %3026 = vmatprep.mubr.msk.bf16.mxu1 %vm3379_vm1, %v3378_v16 }
 0x516   :  { %v3653_v58 = vpop.f32.mrb[8].mxu1 }
 0x517   :  { %v2986_v59 = vpop.f32.mrb[9].mxu1 }
 0x518   :  { %v510_v60 = vpop.f32.mrb[10].mxu1  ;;  %v3655_v61 = vpop.f32.mrb[12].mxu0 }
 0x519   :  { %v2987_v62 = vpop.f32.mrb[11].mxu1  ;;  %v2992_v63 = vpop.f32.mrb[13].mxu0 }
 0x51a   :  { %v556_v0 = vpop.f32.mrb[14].mxu0 }
 0x51b   :  { %v2993_v1 = vpop.f32.mrb[15].mxu0 }
 0x51e   :  { %v618_v2 = vpop.f32.mrb[12].mxu1 }
 0x51f   :  { %v3000_v4 = vpop.f32.mrb[13].mxu1  ;;  %v619_v21 = vadd.f32 %v2702_v13, %v618_v2 }
 0x520   :  { %v621_v36 = vpop.f32.mrb[14].mxu1  ;;  %v684_v5 = vpop.f32.mrb[16].mxu0 }
 0x521   :  { %v685_v6 = vadd.f32 %v2711_v3, %v684_v5  ;;  %v3001_v7 = vpop.f32.mrb[15].mxu1  ;;  %v3008_v8 = vpop.f32.mrb[17].mxu0  ;;  %v622_v26 = vadd.f32 %v2702_v13, %v621_v36  ;;  %v757_v30 = vpack.c.bf16 %v619_v21, %v619_v21 }
 0x522   :  { %v687_v9 = vpop.f32.mrb[18].mxu0  ;;  %v3232_v7 = vld [vmem:[%s4064_s10] sm:$0xff]   ;;  %v3233_v8 = vld [vmem:[%s4064_s10 + $0x8] sm:$0xff]  }
 0x523   :  { %v759_v10 = vpack.c.bf16 %v685_v6, %v685_v6  ;;  %v688_v11 = vadd.f32 %v2711_v3, %v687_v9  ;;  %v3009_v12 = vpop.f32.mrb[19].mxu0  ;;  %v758_v32 = vpack.c.bf16 %v622_v26, %v622_v26 }
 0x525   :  { %v765_v17 = vsel %vm342_vm2, %v759_v10, 0  ;;  %v760_v18 = vpack.c.bf16 %v688_v11, %v688_v11 }
 0x526   :  { %v750_v20 = vpop.f32.mrb[16].mxu1  ;;  %3019 = vmatpush3.bf16.xpose.msra.mxu0 %v765_v17 }
 0x527   :  { %v811_v22 = vsel %vm342_vm2, %v760_v18, 0  ;;  %v751_v23 = vadd.f32 %v2720_v15, %v750_v20  ;;  %v3016_v24 = vpop.f32.mrb[17].mxu1  ;;  %3030 = vmatprep.subr.bf16.mxu0 %v3378_v16 }
 0x528   :  { %v753_v25 = vpop.f32.mrb[18].mxu1  ;;  %3025 = vmatpush3.bf16.xpose.msra.mxu1 %v811_v22 }
 0x529   :  { %v881_v27 = vpack.c.bf16 %v751_v23, %v751_v23  ;;  %v754_v28 = vadd.f32 %v2720_v15, %v753_v25  ;;  %v3017_v29 = vpop.f32.mrb[19].mxu1  ;;  %3036 = vmatprep.subr.bf16.mxu1 %v3378_v16 }
 0x52b   :  { %v882_v31 = vpack.c.bf16 %v754_v28, %v754_v28  ;;  %v887_v35 = vsel %vm469_vm3, %v881_v27, 0  ;;  %v2728_v27 = vld [vmem:[%s4065_s11] ss:$0 sm:$0xff] }
 0x52d   :  { %3021 = vmatmul.mubr.msk.bf16.vlgmr.msra.gmra.mrb[20].mxu0 %vm342_vm2, %v757_v30  ;;  %v933_v37 = vsel %vm469_vm3, %v882_v31, 0 }
 0x52e   :  { %3031 = vmatpush3.bf16.msra.mxu0 %v887_v35  ;;  %3032 = vmatprep.mubr.msk.bf16.mxu0 %vm3379_vm1, %v3378_v16 }
 0x52f   :  { %3027 = vmatmul.mubr.msk.bf16.vlgmr.msra.gmra.mrb[20].mxu1 %vm342_vm2, %v758_v32  ;;  %3042 = vmatprep.subr.bf16.mxu0 %v3378_v16 }
 0x530   :  { %3037 = vmatpush3.bf16.msra.mxu1 %v933_v37  ;;  %3038 = vmatprep.mubr.msk.bf16.mxu1 %vm3379_vm1, %v3378_v16 }
 0x531   :  { %3050 = vmatprep.subr.bf16.mxu1 %v3378_v16 }
 0x600   :  { %v801_v38 = vpop.f32.mrb[20].mxu0 }
 0x601   :  { %v853_v39 = vmul.f32 0.25, %v801_v38  ;;  %v3022_v40 = vpop.f32.mrb[21].mxu0 }
 0x602   :  { %v804_v41 = vpop.f32.mrb[22].mxu0  ;;  %v847_v42 = vpop.f32.mrb[20].mxu1 }
 0x603   :  { %v854_v43 = vmul.f32 0.25, %v847_v42  ;;  %v3023_v44 = vpop.f32.mrb[23].mxu0  ;;  %v3028_v45 = vpop.f32.mrb[21].mxu1  ;;  %v855_v46 = vadd.f32 %v853_v39, %v3601_v14 }
 0x604   :  { %v850_v47 = vpop.f32.mrb[22].mxu1 }
 0x605   :  { %v3029_v48 = vpop.f32.mrb[23].mxu1  ;;  %v857_v49 = vsel %vm439_vm4, %v855_v46, -inf  ;;  %v856_v50 = vadd.f32 %v854_v43, %v3603_v19 }
 0x606   :  { %858 = vmax.xlane.f32.xlu0 %v857_v49  ;;  %v3235_v48 = vld [vmem:[%s4068_s14 + $0x8] sm:$0xff]  }
 0x607   :  { %v860_v51 = vsel %vm439_vm4, %v856_v50, -inf }
 0x608   :  { %861 = vmax.xlane.f32.xlu1 %v860_v51 }
 0x693   :  { %v859_v52 = vpop.xlane.xlu0 %858 }
 0x694   :  { %v863_v53 = vsub.f32 %v855_v46, %v859_v52 }
 0x695   :  { %v862_v54 = vpop.xlane.xlu1 %861 }
 0x696   :  { %v865_v55 = vmul.f32 1.442695, %v863_v53  ;;  %v864_v56 = vsub.f32 %v856_v50, %v862_v54 }
 0x698   :  { %3274 = vpow2.f32 %v865_v55  ;;  %v867_v57 = vmul.f32 1.442695, %v864_v56 }
 0x69a   :  { %3276 = vpow2.f32 %v867_v57  ;;  %v2732_v57 = vld [vmem:[%s4066_s12] ss:$0 sm:$0xff] }
 0x6a2   :  { %v3275_v59 = vpop.eup %3274 }
 0x6a3   :  { %v869_v60 = vsel %vm439_vm4, %v3275_v59, 0.0 }
 0x6a4   :  { %v3277_v62 = vpop.eup %3276  ;;  %870 = vadd.xlane.f32.xlu0 %v869_v60 }
 0x6a5   :  { %v872_v63 = vsel %vm439_vm4, %v3277_v62, 0.0 }
 0x6a6   :  { %873 = vadd.xlane.f32.xlu1 %v872_v63  ;;  %v2733_v63 = vld [vmem:[%s4067_s13] ss:$0 sm:$0xff] }
 0x731   :  { %v871_v0 = vpop.xlane.xlu0 %870 }
 0x732   :  { %3278 = vrcp.f32 %v871_v0 }
 0x733   :  { %v874_v1 = vpop.xlane.xlu1 %873 }
 0x734   :  { %3280 = vrcp.f32 %v874_v1 }
 0x73c   :  { %v3279_v2 = vpop.eup %3278 }
 0x73d   :  { %v876_v3 = vmul.f32 %v3279_v2, %v3275_v59 }
 0x73e   :  { %v3281_v4 = vpop.eup %3280 }
 0x73f   :  { %v878_v36 = vmul.f32 %v3281_v4, %v3277_v62  ;;  %v879_v5 = vpack.c.bf16 %v876_v3, %v876_v3  ;;  %v3236_v4 = vld [vmem:[%s4070_s16] sm:$0xff]  }
 0x741   :  { %3033 = vmatmul.mubr.msk.bf16.vlgmr.msra.gmra.mrb[24].mxu0 %vm439_vm4, %v879_v5  ;;  %v880_v6 = vpack.c.bf16 %v878_v36, %v878_v36  ;;  %v3237_v36 = vld [vmem:[%s4070_s16 + $0x8] sm:$0xff]   ;;  %v3238_v5 = vld [vmem:[%s4070_s16 + $0x10] sm:$0xff]  }
 0x742   :  { %3046 = vmatprep.mubr.msk.bf16.mxu0 %vm3379_vm1, %v3378_v16  ;;  %3043 = vmatpush3.bf16.msra.mxu0 %v3232_v7  ;;  %v2734_v7 = vld [vmem:[%s4069_s15] ss:$0 sm:$0xff] }
 0x743   :  { %3039 = vmatmul.mubr.msk.bf16.vlgmr.msra.gmra.mrb[24].mxu1 %vm439_vm4, %v880_v6  ;;  %3044 = vmatprep.subr.bf16.mxu0 %v3378_v16  ;;  %v3239_v6 = vld [vmem:[%s4070_s16 + $0x18] sm:$0xff]  }
 0x744   :  { %3054 = vmatprep.mubr.msk.bf16.mxu1 %vm3379_vm1, %v3378_v16 }
 0x746   :  { %3045 = vmatpush3.bf16.msra.mxu0 %v3233_v8 }
 0x747   :  { %3058 = vmatprep.subr.bf16.mxu0 %v3378_v16 }
 0x814   :  { %v923_v9 = vpop.f32.mrb[24].mxu0 }
 0x815   :  { %v3034_v10 = vpop.f32.mrb[25].mxu0 }
 0x816   :  { %v926_v11 = vpop.f32.mrb[26].mxu0  ;;  %v969_v12 = vpop.f32.mrb[24].mxu1 }
 0x817   :  { %v3210_v13 = vpack.i.bf16 %v969_v12, %v923_v9  ;;  %v3035_v15 = vpop.f32.mrb[27].mxu0  ;;  %v3040_v17 = vpop.f32.mrb[25].mxu1 }
 0x818   :  { %v972_v18 = vpop.f32.mrb[26].mxu1 }
 0x819   :  { %v3041_v20 = vpop.f32.mrb[27].mxu1  ;;  %3211 = vrot.lane.b32.xlu0 %v3210_v13, %s3380_s3 }
 0x88b   :  { %v3212_v21 = vpop.permute.xlu0 %3211 }
 0x88c   :  { %v3214_v22 = vunpack.i.h.bf16 %v3212_v21  ;;  %v3213_v23 = vunpack.i.l.bf16 %v3212_v21 }
 0x88e   :  { %v984_v24 = vsel %vm342_vm2, %v3655_v61, %v3214_v22  ;;  %v983_v25 = vsel %vm342_vm2, %v3653_v58, %v3213_v23 }
 0x88f   :  { %v985_v26 = vpack.c.bf16 %v984_v24, %v983_v25 }
 0x891   :  { %3047 = vmatmul.mubr.msk.bf16.vlgmr.msra.gmra.mrb[28].mxu0 %vm80_vm0, %v985_v26 }
 0x892   :  { %3066 = vmatprep.mubr.msk.bf16.mxu0 %vm3379_vm1, %v3378_v16  ;;  %3059 = vmatpush3.bf16.msra.mxu0 %v3236_v4 }
 0x893   :  { %3060 = vmatprep.subr.bf16.mxu0 %v3378_v16 }
 0x896   :  { %3061 = vmatpush3.bf16.msra.mxu0 %v3237_v36 }
 0x897   :  { %3062 = vmatprep.subr.bf16.mxu0 %v3378_v16 }
 0x89a   :  { %3063 = vmatpush3.bf16.msra.mxu0 %v3238_v5 }
 0x89b   :  { %3064 = vmatprep.subr.bf16.mxu0 %v3378_v16 }
 0x89e   :  { %3065 = vmatpush3.bf16.msra.mxu0 %v3239_v6 }
 0x89f   :  { %3086 = vmatprep.subr.bf16.mxu0 %v3378_v16 }
 0x964   :  { %v1046_v28 = vpop.f32.mrb[28].mxu0 }
 0x965   :  { %v1047_v29 = vadd.f32 %v2728_v27, %v1046_v28  ;;  %v3048_v30 = vpop.f32.mrb[29].mxu0 }
 0x966   :  { %v1049_v31 = vpop.f32.mrb[30].mxu0 }
 0x967   :  { %v1050_v32 = vadd.f32 %v2728_v27, %v1049_v31  ;;  %v3049_v35 = vpop.f32.mrb[31].mxu0  ;;  %v1053_v61 = vadd.f32 %v1047_v29, %v3544_v33 }
 0x969   :  { %v1057_v58 = vsel %vm80_vm0, %v1053_v61, 0.0  ;;  %v1054_v37 = vadd.f32 %v1050_v32, %v3546_v34  ;;  %v3234_v34 = vld [vmem:[%s4068_s14] sm:$0xff]  }
 0x96a   :  { %1058 = vadd.xlane.f32.xlu1 %v1057_v58  ;;  %3051 = vmatpush3.bf16.msra.mxu1 %v3234_v34 }
 0x96b   :  { %v1060_v38 = vsel %vm80_vm0, %v1054_v37, 0.0  ;;  %3052 = vmatprep.subr.bf16.mxu1 %v3378_v16 }
 0x96e   :  { %1061 = vadd.xlane.f32.xlu1 %v1060_v38  ;;  %3053 = vmatpush3.bf16.msra.mxu1 %v3235_v48 }
 0x96f   :  { %3070 = vmatprep.subr.bf16.mxu1 %v3378_v16 }
 0x9f7   :  { %v1059_v39 = vpop.xlane.xlu1 %1058 }
 0x9f8   :  { %v1063_v40 = vmul.f32 0.03125, %v1059_v39 }
 0x9fa   :  { %v1065_v41 = vsub.f32 %v1053_v61, %v1063_v40 }
 0x9fb   :  { %v1062_v42 = vpop.xlane.xlu1 %1061 }
 0x9fc   :  { %v1064_v43 = vmul.f32 0.03125, %v1062_v42  ;;  %v1067_v44 = vmul.f32 %v1065_v41, %v1065_v41 }
 0x9fe   :  { %v1066_v45 = vsub.f32 %v1054_v37, %v1064_v43  ;;  %v1069_v46 = vsel %vm80_vm0, %v1067_v44, 0.0 }
 0x9ff   :  { %1070 = vadd.xlane.f32.xlu1 %v1069_v46 }
 0xa00   :  { %v1068_v47 = vmul.f32 %v1066_v45, %v1066_v45 }
 0xa02   :  { %v1072_v33 = vsel %vm80_vm0, %v1068_v47, 0.0 }
 0xa03   :  { %1073 = vadd.xlane.f32.xlu1 %v1072_v33 }
 0xa8c   :  { %v1071_v49 = vpop.xlane.xlu1 %1070 }
 0xa8d   :  { %v1075_v50 = vmul.f32 0.03125, %v1071_v49 }
 0xa8f   :  { %v1077_v51 = vadd.f32 1e-07, %v1075_v50 }
 0xa90   :  { %v1074_v52 = vpop.xlane.xlu1 %1073 }
 0xa91   :  { %3282 = vrsqrt.f32 %v1077_v51  ;;  %v1076_v53 = vmul.f32 0.03125, %v1074_v52 }
 0xa93   :  { %v1078_v54 = vadd.f32 1e-07, %v1076_v53 }
 0xa95   :  { %3284 = vrsqrt.f32 %v1078_v54  ;;  %v3381_v54 = vmov -1.0  }
 0xa9b   :  { %v3283_v55 = vpop.eup %3282 }
 0xa9c   :  { %v1081_v56 = vmul.f32 %v3283_v55, %v1065_v41 }
 0xa9e   :  { %v1089_v60 = vmul.f32 %v2732_v57, %v1081_v56 }
 0xa9f   :  { %v3285_v59 = vpop.eup %3284 }
 0xaa0   :  { %v1082_v62 = vmul.f32 %v3285_v59, %v1066_v45  ;;  %v3731_v1 = vadd.f32 %v2733_v63, %v1089_v60 }
 0xaa2   :  { %v1090_v0 = vmul.f32 %v2732_v57, %v1082_v62 }
 0xaa4   :  { %v3733_v2 = vadd.f32 %v2733_v63, %v1090_v0 }
 0xaa6   :  { %v1099_v3 = vpack.c.bf16 %v3733_v2, %v3731_v1 }
 0xaa8   :  { %3055 = vmatmul.mubr.msk.bf16.vlgmr.msra.gmra.mrb[28].mxu1 %vm80_vm0, %v1099_v3 }
 0xaa9   :  { %3074 = vmatprep.mubr.msk.bf16.mxu1 %vm3379_vm1, %v3378_v16 }
 0xb7b   :  { %v1160_v8 = vpop.f32.mrb[28].mxu1 }
 0xb7c   :  { %v1161_v9 = vadd.f32 %v2734_v7, %v1160_v8  ;;  %v3056_v10 = vpop.f32.mrb[29].mxu1 }
 0xb7d   :  { %v1163_v11 = vpop.f32.mrb[30].mxu1 }
 0xb7e   :  { %v1169_v12 = vmul.f32 0.70710677, %v1161_v9  ;;  %v1164_v13 = vadd.f32 %v2734_v7, %v1163_v11  ;;  %v3057_v15 = vpop.f32.mrb[31].mxu1  ;;  %v1167_v0 = vmul.f32 0.5, %v1161_v9  ;;  %v2738_v7 = vld [vmem:[%s4071_s17] ss:$0 sm:$0xff] }
 0xb80   :  { %v1175_v17 = vand.u32 2147483647, %v1169_v12  ;;  %v1170_v18 = vmul.f32 0.70710677, %v1164_v13  ;;  %vm1171_vm5 = vcmp.ge.f32.partialorder %v1169_v12, 0.0  ;;  %v1168_v3 = vmul.f32 0.5, %v1164_v13 }
 0xb81   :  { %v1173_v55 = vsel %vm1171_vm5, 1.0, %v3381_v54 }
 0xb82   :  { %v1177_v20 = vmul.f32 0.3275911, %v1175_v17  ;;  %v1176_v21 = vand.u32 2147483647, %v1170_v18  ;;  %v1201_v25 = vmul.f32 %v1175_v17, %v1175_v17  ;;  %vm1172_vm6 = vcmp.ge.f32.partialorder %v1170_v18, 0.0 }
 0xb83   :  { %v1174_v60 = vsel %vm1172_vm6, 1.0, %v3381_v54 }
 0xb84   :  { %v1179_v22 = vadd.f32 1.0, %v1177_v20  ;;  %v1178_v23 = vmul.f32 0.3275911, %v1176_v21  ;;  %v1202_v26 = vmul.f32 %v1176_v21, %v1176_v21  ;;  %v1203_v28 = vsub.f32 0.0, %v1201_v25 }
 0xb86   :  { %3286 = vrcp.f32 %v1179_v22  ;;  %v1180_v24 = vadd.f32 1.0, %v1178_v23  ;;  %v1204_v32 = vsub.f32 0.0, %v1202_v26  ;;  %v1205_v35 = vmul.f32 1.442695, %v1203_v28 }
 0xb88   :  { %3288 = vrcp.f32 %v1180_v24  ;;  %v1207_v39 = vmul.f32 1.442695, %v1204_v32  ;;  %v3243_v32 = vld [vmem:[%s4097_s27 + $0x28] sm:$0xff]  }
 0xb89   :  { %3290 = vpow2.f32 %v1205_v35 }
 0xb8a   :  { %3292 = vpow2.f32 %v1207_v39 }
 0xb90   :  { %v3287_v27 = vpop.eup %3286 }
 0xb91   :  { %v1183_v29 = vmul.f32 1.0614054, %v3287_v27 }
 0xb92   :  { %v3289_v30 = vpop.eup %3288 }
 0xb93   :  { %v1185_v31 = vadd.f32 -1.4531521, %v1183_v29  ;;  %v1184_v61 = vmul.f32 1.0614054, %v3289_v30  ;;  %v3291_v48 = vpop.eup %3290 }
 0xb94   :  { %v3293_v52 = vpop.eup %3292 }
 0xb95   :  { %v1187_v58 = vmul.f32 %v3287_v27, %v1185_v31  ;;  %v1186_v37 = vadd.f32 -1.4531521, %v1184_v61  ;;  %v3242_v31 = vld [vmem:[%s4093_s2 + $0x28] sm:$0xff]  }
 0xb97   :  { %v1189_v38 = vadd.f32 1.4214138, %v1187_v58  ;;  %v1188_v40 = vmul.f32 %v3289_v30, %v1186_v37 }
 0xb99   :  { %v1191_v41 = vmul.f32 %v3287_v27, %v1189_v38  ;;  %v1190_v42 = vadd.f32 1.4214138, %v1188_v40 }
 0xb9b   :  { %v1193_v43 = vadd.f32 -0.28449672, %v1191_v41  ;;  %v1192_v44 = vmul.f32 %v3289_v30, %v1190_v42  ;;  %v2744_v42 = vld [vmem:[%s4072_s18] ss:$0 sm:$0xff] }
 0xb9d   :  { %v1195_v45 = vmul.f32 %v3287_v27, %v1193_v43  ;;  %v1194_v46 = vadd.f32 -0.28449672, %v1192_v44 }
 0xb9f   :  { %v1197_v47 = vadd.f32 0.2548296, %v1195_v45  ;;  %v1196_v33 = vmul.f32 %v3289_v30, %v1194_v46  ;;  %v2745_v46 = vld [vmem:[%s4073_s19] ss:$0 sm:$0xff] }
 0xba1   :  { %v1199_v34 = vmul.f32 %v3287_v27, %v1197_v47  ;;  %v1198_v49 = vadd.f32 0.2548296, %v1196_v33 }
 0xba3   :  { %v1209_v50 = vmul.f32 %v3291_v48, %v1199_v34  ;;  %v1200_v51 = vmul.f32 %v3289_v30, %v1198_v49  ;;  %v3241_v30 = vld [vmem:[%s4097_s27 + $0x20] sm:$0xff]  }
 0xba4   :  { %v3244_v48 = vld [vmem:[%s4094_s7 + $0x20] sm:$0xff]  }
 0xba5   :  { %v1211_v53 = vsub.f32 1.0, %v1209_v50  ;;  %v1210_v56 = vmul.f32 %v3293_v52, %v1200_v51  ;;  %v3245_v50 = vld [vmem:[%s4094_s7 + $0x28] sm:$0xff]  }
 0xba7   :  { %v1213_v57 = vmul.f32 %v1211_v53, %v1173_v55  ;;  %v1212_v59 = vsub.f32 1.0, %v1210_v56 }
 0xba9   :  { %v1215_v62 = vadd.f32 1.0, %v1213_v57  ;;  %v1214_v63 = vmul.f32 %v1212_v59, %v1174_v60 }
 0xbab   :  { %v1216_v4 = vadd.f32 1.0, %v1214_v63  ;;  %v1217_v36 = vmul.f32 %v1215_v62, %v1167_v0  ;;  %v2760_v62 = vld [vmem:[%s4062_s8 + $0x2] ss:$0 sm:$0xff] }
 0xbad   :  { %v1218_v5 = vmul.f32 %v1216_v4, %v1168_v3  ;;  %v2769_v4 = vld [vmem:[%s4063_s9 + $0x2] ss:$0 sm:$0xff] }
 0xbaf   :  { %v1219_v6 = vpack.c.bf16 %v1218_v5, %v1217_v36 }
 0xbb1   :  { %3067 = vmatmul.mubr.msk.bf16.vlgmr.msra.gmra.mrb[32].mxu0 %vm1259_vm7, %v1219_v6 }
 0xbb2   :  { %3090 = vmatprep.mubr.msk.bf16.mxu0 %vm3379_vm1, %v3378_v16  ;;  %3087 = vmatpush3.bf16.msra.mxu0 %v3241_v30 }
 0xbb3   :  { %3088 = vmatprep.subr.bf16.mxu0 %v3378_v16 }
 0xbb6   :  { %3089 = vmatpush3.bf16.msra.mxu0 %v3243_v32 }
 0xbb7   :  { %3100 = vmatprep.subr.bf16.mxu0 %v3378_v16 }
 0xc84   :  { %v1297_v8 = vpop.f32.mrb[32].mxu0 }
 0xc85   :  { %v1298_v10 = vadd.f32 %v2738_v7, %v1297_v8  ;;  %v3068_v11 = vpop.f32.mrb[33].mxu0  ;;  %v2751_v8 = vld [vmem:[%s4098_s24 + $0x2] ss:$0 sm:$0xff] }
 0xc86   :  { %v1300_v12 = vpop.f32.mrb[34].mxu0 }
 0xc87   :  { %v1301_v9 = vadd.f32 %v2738_v7, %v1300_v12  ;;  %v3069_v13 = vpop.f32.mrb[35].mxu0  ;;  %v1304_v15 = vadd.f32 %v1298_v10, %v3731_v1 }
 0xc89   :  { %v1308_v17 = vsel %vm80_vm0, %v1304_v15, 0.0  ;;  %v1305_v18 = vadd.f32 %v1301_v9, %v3733_v2  ;;  %v3240_v2 = vld [vmem:[%s4093_s2 + $0x20] sm:$0xff]  }
 0xc8a   :  { %1309 = vadd.xlane.f32.xlu1 %v1308_v17  ;;  %3071 = vmatpush3.bf16.msra.mxu1 %v3240_v2 }
 0xc8b   :  { %v1311_v20 = vsel %vm80_vm0, %v1305_v18, 0.0  ;;  %3072 = vmatprep.subr.bf16.mxu1 %v3378_v16 }
 0xc8e   :  { %1312 = vadd.xlane.f32.xlu1 %v1311_v20  ;;  %3073 = vmatpush3.bf16.msra.mxu1 %v3242_v31 }
 0xc8f   :  { %3078 = vmatprep.subr.bf16.mxu1 %v3378_v16 }
 0xd17   :  { %v1310_v21 = vpop.xlane.xlu1 %1309 }
 0xd18   :  { %v1314_v22 = vmul.f32 0.03125, %v1310_v21 }
 0xd1a   :  { %v1316_v23 = vsub.f32 %v1304_v15, %v1314_v22 }
 0xd1b   :  { %v1313_v24 = vpop.xlane.xlu1 %1312 }
 0xd1c   :  { %v1315_v25 = vmul.f32 0.03125, %v1313_v24  ;;  %v1318_v26 = vmul.f32 %v1316_v23, %v1316_v23 }
 0xd1e   :  { %v1317_v27 = vsub.f32 %v1305_v18, %v1315_v25  ;;  %v1320_v28 = vsel %vm80_vm0, %v1318_v26, 0.0 }
 0xd1f   :  { %1321 = vadd.xlane.f32.xlu0 %v1320_v28 }
 0xd20   :  { %v1319_v29 = vmul.f32 %v1317_v27, %v1317_v27 }
 0xd22   :  { %v1323_v1 = vsel %vm80_vm0, %v1319_v29, 0.0 }
 0xd23   :  { %1324 = vadd.xlane.f32.xlu1 %v1323_v1 }
 0xdac   :  { %v1322_v35 = vpop.xlane.xlu0 %1321 }
 0xdad   :  { %v1326_v61 = vmul.f32 0.03125, %v1322_v35 }
 0xdaf   :  { %v1328_v58 = vadd.f32 1e-07, %v1326_v61 }
 0xdb0   :  { %v1325_v37 = vpop.xlane.xlu1 %1324 }
 0xdb1   :  { %3294 = vrsqrt.f32 %v1328_v58  ;;  %v1327_v38 = vmul.f32 0.03125, %v1325_v37 }
 0xdb3   :  { %v1329_v39 = vadd.f32 1e-07, %v1327_v38 }
 0xdb5   :  { %3296 = vrsqrt.f32 %v1329_v39 }
 0xdbb   :  { %v3295_v40 = vpop.eup %3294 }
 0xdbc   :  { %v1332_v41 = vmul.f32 %v3295_v40, %v1316_v23 }
 0xdbe   :  { %v1340_v44 = vmul.f32 %v2744_v42, %v1332_v41 }
 0xdbf   :  { %v3297_v43 = vpop.eup %3296 }
 0xdc0   :  { %v1333_v45 = vmul.f32 %v3297_v43, %v1317_v27  ;;  %v3795_v33 = vadd.f32 %v2745_v46, %v1340_v44 }
 0xdc2   :  { %v1341_v47 = vmul.f32 %v2744_v42, %v1333_v45 }
 0xdc4   :  { %v3797_v34 = vadd.f32 %v2745_v46, %v1341_v47 }
 0xdc6   :  { %v3804_v49 = vpack.c.bf16 %v3797_v34, %v3795_v33 }
 0xdc8   :  { %3075 = vmatmul.mubr.msk.bf16.vlgmr.msra.gmra.mrb[32].mxu1 %vm80_vm0, %v3804_v49  ;;  %3091 = vmatmul.mubr.msk.bf16.vlgmr.msra.gmra.mrb[36].mxu0 %vm80_vm0, %v3804_v49 }
 0xdc9   :  { %3079 = vmatpush3.bf16.msra.mxu1 %v3244_v48  ;;  %3082 = vmatprep.mubr.msk.bf16.mxu1 %vm3379_vm1, %v3378_v16 }
 0xdca   :  { %3080 = vmatprep.subr.bf16.mxu1 %v3378_v16  ;;  %3102 = vmatprep.mubr.msk.bf16.mxu0 %vm3379_vm1, %v3378_v16 }
 0xdcd   :  { %3081 = vmatpush3.bf16.msra.mxu1 %v3245_v50 }
 0xdce   :  { %3094 = vmatprep.subr.bf16.mxu1 %v3378_v16 }
 0xdd0   :  { %3083 = vmatmul.mubr.msk.bf16.vlgmr.msra.gmra.mrb[36].mxu1 %vm80_vm0, %v3804_v49 }
 0xdd1   :  { %3096 = vmatprep.mubr.msk.bf16.mxu1 %vm3379_vm1, %v3378_v16 }
 0xe9b   :  { %v1413_v51 = vpop.f32.mrb[32].mxu1  ;;  %v1545_v52 = vpop.f32.mrb[36].mxu0 }
 0xe9c   :  { %v3076_v53 = vpop.f32.mrb[33].mxu1  ;;  %v3092_v55 = vpop.f32.mrb[37].mxu0  ;;  %v1546_v10 = vadd.f32 %v2769_v4, %v1545_v52  ;;  %v1414_v9 = vadd.f32 %v2751_v8, %v1413_v51 }
 0xe9d   :  { %v1416_v56 = vpop.f32.mrb[34].mxu1  ;;  %v1548_v57 = vpop.f32.mrb[38].mxu0  ;;  %v3246_v53 = vld [vmem:[%s4094_s7 + $0x30] sm:$0xff]  }
 0xe9e   :  { %v3077_v59 = vpop.f32.mrb[35].mxu1  ;;  %v3093_v60 = vpop.f32.mrb[39].mxu0  ;;  %v1549_v13 = vadd.f32 %v2769_v4, %v1548_v57  ;;  %v1676_v17 = vpack.c.bf16 %v1546_v10, %v1546_v10  ;;  %v1417_v18 = vadd.f32 %v2751_v8, %v1416_v56  ;;  %v1552_v20 = vpack.c.bf16 %v1414_v9, %v1414_v9 }
 0xe9f   :  { %v3247_v59 = vld [vmem:[%s4093_s2 + $0x30] sm:$0xff]   ;;  %v3248_v60 = vld [vmem:[%s4094_s7 + $0x38] sm:$0xff]  }
 0xea0   :  { %v1677_v21 = vpack.c.bf16 %v1549_v13, %v1549_v13  ;;  %v1682_v22 = vsel %vm469_vm3, %v1676_v17, 0  ;;  %v1553_v23 = vpack.c.bf16 %v1417_v18, %v1417_v18 }
 0xea2   :  { %v1728_v24 = vsel %vm469_vm3, %v1677_v21, 0  ;;  %v2782_v21 = vld [vmem:[%s4098_s24 + $0x3] ss:$0 sm:$0xff] }
 0xea3   :  { %v1479_v63 = vpop.f32.mrb[36].mxu1 }
 0xea4   :  { %v1480_v0 = vadd.f32 %v2760_v62, %v1479_v63  ;;  %v3084_v3 = vpop.f32.mrb[37].mxu1  ;;  %v3249_v63 = vld [vmem:[%s4093_s2 + $0x38] sm:$0xff]  }
 0xea5   :  { %v1482_v36 = vpop.f32.mrb[38].mxu1  ;;  %v3251_v3 = vld [vmem:[%s4097_s27 + $0x38] sm:$0xff]  }
 0xea6   :  { %v1554_v5 = vpack.c.bf16 %v1480_v0, %v1480_v0  ;;  %v1483_v6 = vadd.f32 %v2760_v62, %v1482_v36  ;;  %v3085_v7 = vpop.f32.mrb[39].mxu1  ;;  %v3250_v0 = vld [vmem:[%s4097_s27 + $0x30] sm:$0xff]  }
 0xea8   :  { %v1560_v11 = vsel %vm342_vm2, %v1554_v5, 0  ;;  %v1555_v12 = vpack.c.bf16 %v1483_v6, %v1483_v6 }
 0xea9   :  { %3095 = vmatpush3.bf16.xpose.msra.mxu1 %v1560_v11  ;;  %v2791_v11 = vld [vmem:[%s4062_s8 + $0x3] ss:$0 sm:$0xff] }
 0xeaa   :  { %v1606_v15 = vsel %vm342_vm2, %v1555_v12, 0  ;;  %3106 = vmatprep.subr.bf16.mxu1 %v3378_v16 }
 0xeab   :  { %3101 = vmatpush3.bf16.xpose.msra.mxu0 %v1606_v15 }
 0xeac   :  { %3112 = vmatprep.subr.bf16.mxu0 %v3378_v16 }
 0xeb0   :  { %3097 = vmatmul.mubr.msk.bf16.vlgmr.msra.gmra.mrb[40].mxu1 %vm342_vm2, %v1552_v20 }
 0xeb1   :  { %3107 = vmatpush3.bf16.msra.mxu1 %v1682_v22  ;;  %3108 = vmatprep.mubr.msk.bf16.mxu1 %vm3379_vm1, %v3378_v16 }
 0xeb2   :  { %3103 = vmatmul.mubr.msk.bf16.vlgmr.msra.gmra.mrb[40].mxu0 %vm342_vm2, %v1553_v23  ;;  %3118 = vmatprep.subr.bf16.mxu1 %v3378_v16 }
 0xeb3   :  { %3113 = vmatpush3.bf16.msra.mxu0 %v1728_v24  ;;  %3114 = vmatprep.mubr.msk.bf16.mxu0 %vm3379_vm1, %v3378_v16 }
 0xeb4   :  { %3126 = vmatprep.subr.bf16.mxu0 %v3378_v16 }
 0xf83   :  { %v1596_v25 = vpop.f32.mrb[40].mxu1 }
 0xf84   :  { %v3098_v26 = vpop.f32.mrb[41].mxu1  ;;  %v1648_v29 = vmul.f32 0.25, %v1596_v25 }
 0xf85   :  { %v1599_v27 = vpop.f32.mrb[42].mxu1  ;;  %v1642_v28 = vpop.f32.mrb[40].mxu0 }
 0xf86   :  { %v1649_v1 = vmul.f32 0.25, %v1642_v28  ;;  %v3099_v2 = vpop.f32.mrb[43].mxu1  ;;  %v3104_v30 = vpop.f32.mrb[41].mxu0  ;;  %v1650_v58 = vadd.f32 %v1648_v29, %v3601_v14 }
 0xf87   :  { %v1645_v31 = vpop.f32.mrb[42].mxu0  ;;  %v2800_v2 = vld [vmem:[%s4063_s9 + $0x3] ss:$0 sm:$0xff] }
 0xf88   :  { %v3105_v32 = vpop.f32.mrb[43].mxu0  ;;  %v1651_v35 = vadd.f32 %v1649_v1, %v3603_v19  ;;  %v1652_v37 = vsel %vm439_vm4, %v1650_v58, -inf }
 0xf8a   :  { %v1655_v61 = vsel %vm439_vm4, %v1651_v35, -inf }
 0xf8b   :  { %1656 = vmax.xlane.f32.xlu1 %v1655_v61 }
 0xf8f   :  { %1653 = vmax.xlane.f32.xlu1 %v1652_v37 }
0x1018   :  { %v1657_v38 = vpop.xlane.xlu1 %1656 }
0x1019   :  { %v1659_v39 = vsub.f32 %v1651_v35, %v1657_v38 }
0x101b   :  { %v1662_v40 = vmul.f32 1.442695, %v1659_v39 }
0x101c   :  { %v1654_v41 = vpop.xlane.xlu1 %1653 }
0x101d   :  { %3298 = vpow2.f32 %v1662_v40  ;;  %v1658_v42 = vsub.f32 %v1650_v58, %v1654_v41 }
0x101f   :  { %v1660_v43 = vmul.f32 1.442695, %v1658_v42 }
0x1021   :  { %3300 = vpow2.f32 %v1660_v43 }
0x1027   :  { %v3299_v44 = vpop.eup %3298 }
0x1028   :  { %v1667_v45 = vsel %vm439_vm4, %v3299_v44, 0.0 }
0x1029   :  { %1668 = vadd.xlane.f32.xlu1 %v1667_v45 }
0x102b   :  { %v3301_v46 = vpop.eup %3300 }
0x102c   :  { %v1664_v47 = vsel %vm439_vm4, %v3301_v46, 0.0 }
0x102d   :  { %1665 = vadd.xlane.f32.xlu1 %v1664_v47 }
0x10b6   :  { %v1669_v48 = vpop.xlane.xlu1 %1668 }
0x10b7   :  { %3302 = vrcp.f32 %v1669_v48 }
0x10ba   :  { %v1666_v50 = vpop.xlane.xlu1 %1665 }
0x10bb   :  { %3304 = vrcp.f32 %v1666_v50 }
0x10c1   :  { %v3303_v51 = vpop.eup %3302 }
0x10c2   :  { %v1673_v52 = vmul.f32 %v3303_v51, %v3299_v44 }
0x10c4   :  { %v1675_v55 = vpack.c.bf16 %v1673_v52, %v1673_v52 }
0x10c5   :  { %v3305_v56 = vpop.eup %3304 }
0x10c6   :  { %v1671_v57 = vmul.f32 %v3305_v56, %v3301_v46  ;;  %3115 = vmatmul.mubr.msk.bf16.vlgmr.msra.gmra.mrb[44].mxu0 %vm439_vm4, %v1675_v55 }
0x10c7   :  { %3127 = vmatpush3.bf16.msra.mxu0 %v3246_v53  ;;  %3130 = vmatprep.mubr.msk.bf16.mxu0 %vm3379_vm1, %v3378_v16 }
0x10c8   :  { %v1674_v62 = vpack.c.bf16 %v1671_v57, %v1671_v57  ;;  %3128 = vmatprep.subr.bf16.mxu0 %v3378_v16 }
0x10ca   :  { %3109 = vmatmul.mubr.msk.bf16.vlgmr.msra.gmra.mrb[44].mxu1 %vm439_vm4, %v1674_v62 }
0x10cb   :  { %3119 = vmatpush3.bf16.msra.mxu1 %v3247_v59  ;;  %3129 = vmatpush3.bf16.msra.mxu0 %v3248_v60 }
0x10cc   :  { %3120 = vmatprep.subr.bf16.mxu1 %v3378_v16  ;;  %3122 = vmatprep.mubr.msk.bf16.mxu1 %vm3379_vm1, %v3378_v16 }
0x10cd   :  { %3142 = vmatprep.subr.bf16.mxu0 %v3378_v16 }
0x10ce   :  { %3131 = vmatmul.mubr.msk.bf16.vlgmr.msra.gmra.mrb[48].mxu0 %vm80_vm0, %v3804_v49 }
0x10cf   :  { %3121 = vmatpush3.bf16.msra.mxu1 %v3249_v63  ;;  %3144 = vmatprep.mubr.msk.bf16.mxu0 %vm3379_vm1, %v3378_v16 }
0x10d0   :  { %3134 = vmatprep.subr.bf16.mxu1 %v3378_v16 }
0x10d2   :  { %3123 = vmatmul.mubr.msk.bf16.vlgmr.msra.gmra.mrb[48].mxu1 %vm80_vm0, %v3804_v49 }
0x10d3   :  { %3135 = vmatpush3.bf16.msra.mxu1 %v3250_v0  ;;  %3138 = vmatprep.mubr.msk.bf16.mxu1 %vm3379_vm1, %v3378_v16 }
0x10d4   :  { %3136 = vmatprep.subr.bf16.mxu1 %v3378_v16 }
0x10d7   :  { %3137 = vmatpush3.bf16.msra.mxu1 %v3251_v3 }
0x10d8   :  { %3148 = vmatprep.subr.bf16.mxu1 %v3378_v16 }
0x10da   :  { %3139 = vmatmul.mubr.msk.bf16.vlgmr.msra.gmra.mrb[52].mxu1 %vm80_vm0, %v3804_v49 }
0x10db   :  { %3150 = vmatprep.mubr.msk.bf16.mxu1 %vm3379_vm1, %v3378_v16 }
0x1199   :  { %v3894_v4 = vpop.f32.mrb[44].mxu0 }
0x119a   :  { %v3116_v36 = vpop.f32.mrb[45].mxu0 }
0x119b   :  { %v1767_v5 = vpop.f32.mrb[46].mxu0 }
0x119c   :  { %v3117_v6 = vpop.f32.mrb[47].mxu0 }
0x119d   :  { %v3896_v7 = vpop.f32.mrb[44].mxu1 }
0x119e   :  { %v3110_v8 = vpop.f32.mrb[45].mxu1 }
0x119f   :  { %v1721_v10 = vpop.f32.mrb[46].mxu1 }
0x11a0   :  { %v3111_v12 = vpop.f32.mrb[47].mxu1 }
0x11a1   :  { %v1895_v9 = vpop.f32.mrb[48].mxu0 }
0x11a2   :  { %v1896_v13 = vadd.f32 %v2791_v11, %v1895_v9  ;;  %v3132_v49 = vpop.f32.mrb[49].mxu0 }
0x11a3   :  { %v1898_v15 = vpop.f32.mrb[50].mxu0 }
0x11a4   :  { %v1970_v17 = vpack.c.bf16 %v1896_v13, %v1896_v13  ;;  %v1899_v18 = vadd.f32 %v2791_v11, %v1898_v15  ;;  %v3133_v20 = vpop.f32.mrb[51].mxu0 }
0x11a5   :  { %v1829_v22 = vpop.f32.mrb[48].mxu1 }
0x11a6   :  { %v1976_v23 = vsel %vm342_vm2, %v1970_v17, 0  ;;  %v1971_v24 = vpack.c.bf16 %v1899_v18, %v1899_v18  ;;  %v3124_v25 = vpop.f32.mrb[49].mxu1  ;;  %v1830_v28 = vadd.f32 %v2782_v21, %v1829_v22  ;;  %v3252_v17 = vld [vmem:[%s4064_s10 + $0x10] sm:$0xff]   ;;  %v3253_v18 = vld [vmem:[%s4064_s10 + $0x18] sm:$0xff]  }
0x11a7   :  { %v1832_v26 = vpop.f32.mrb[50].mxu1  ;;  %3143 = vmatpush3.bf16.xpose.msra.mxu0 %v1976_v23 }
0x11a8   :  { %v2022_v27 = vsel %vm342_vm2, %v1971_v24, 0  ;;  %v3125_v29 = vpop.f32.mrb[51].mxu1  ;;  %3154 = vmatprep.subr.bf16.mxu0 %v3378_v16  ;;  %v1833_v1 = vadd.f32 %v2782_v21, %v1832_v26  ;;  %v1968_v30 = vpack.c.bf16 %v1830_v28, %v1830_v28 }
0x11a9   :  { %3149 = vmatpush3.bf16.xpose.msra.mxu1 %v2022_v27 }
0x11aa   :  { %3160 = vmatprep.subr.bf16.mxu1 %v3378_v16  ;;  %v1969_v32 = vpack.c.bf16 %v1833_v1, %v1833_v1 }
0x11ad   :  { %v1961_v31 = vpop.f32.mrb[52].mxu1 }
0x11ae   :  { %v1962_v35 = vadd.f32 %v2800_v2, %v1961_v31  ;;  %v3140_v61 = vpop.f32.mrb[53].mxu1  ;;  %3145 = vmatmul.mubr.msk.bf16.vlgmr.msra.gmra.mrb[52].mxu0 %vm342_vm2, %v1968_v30 }
0x11af   :  { %v1964_v58 = vpop.f32.mrb[54].mxu1  ;;  %3156 = vmatprep.mubr.msk.bf16.mxu0 %vm3379_vm1, %v3378_v16 }
0x11b0   :  { %v2092_v37 = vpack.c.bf16 %v1962_v35, %v1962_v35  ;;  %v1965_v38 = vadd.f32 %v2800_v2, %v1964_v58  ;;  %v3141_v39 = vpop.f32.mrb[55].mxu1  ;;  %3151 = vmatmul.mubr.msk.bf16.vlgmr.msra.gmra.mrb[56].mxu1 %vm342_vm2, %v1969_v32  ;;  %v2813_v35 = vld [vmem:[%s4065_s11 + $0x1] ss:$0 sm:$0xff] }
0x11b1   :  { %3162 = vmatprep.mubr.msk.bf16.mxu1 %vm3379_vm1, %v3378_v16 }
0x11b2   :  { %v2098_v40 = vsel %vm469_vm3, %v2092_v37, 0  ;;  %v2093_v41 = vpack.c.bf16 %v1965_v38, %v1965_v38 }
0x11b3   :  { %3155 = vmatpush3.bf16.msra.mxu0 %v2098_v40 }
0x11b4   :  { %v2144_v42 = vsel %vm469_vm3, %v2093_v41, 0  ;;  %3166 = vmatprep.subr.bf16.mxu0 %v3378_v16 }
0x11b5   :  { %3161 = vmatpush3.bf16.msra.mxu1 %v2144_v42 }
0x11b6   :  { %3174 = vmatprep.subr.bf16.mxu1 %v3378_v16 }
0x1281   :  { %v2012_v43 = vpop.f32.mrb[52].mxu0 }
0x1282   :  { %v2064_v44 = vmul.f32 0.25, %v2012_v43  ;;  %v3146_v45 = vpop.f32.mrb[53].mxu0 }
0x1283   :  { %v2015_v46 = vpop.f32.mrb[54].mxu0  ;;  %v2058_v47 = vpop.f32.mrb[56].mxu1 }
0x1284   :  { %v2065_v48 = vmul.f32 0.25, %v2058_v47  ;;  %v3147_v50 = vpop.f32.mrb[55].mxu0  ;;  %v3152_v51 = vpop.f32.mrb[57].mxu1  ;;  %v2066_v52 = vadd.f32 %v2064_v44, %v3601_v14 }
0x1285   :  { %v2061_v53 = vpop.f32.mrb[58].mxu1 }
0x1286   :  { %v3153_v55 = vpop.f32.mrb[59].mxu1  ;;  %v2068_v56 = vsel %vm439_vm4, %v2066_v52, -inf  ;;  %v2067_v57 = vadd.f32 %v2065_v48, %v3603_v19  ;;  %v3255_v53 = vld [vmem:[%s4068_s14 + $0x18] sm:$0xff]  }
0x1287   :  { %2069 = vmax.xlane.f32.xlu1 %v2068_v56 }
0x1288   :  { %v2071_v59 = vsel %vm439_vm4, %v2067_v57, -inf }
0x128b   :  { %2072 = vmax.xlane.f32.xlu1 %v2071_v59 }
0x1314   :  { %v2070_v60 = vpop.xlane.xlu1 %2069 }
0x1315   :  { %v2074_v62 = vsub.f32 %v2066_v52, %v2070_v60 }
0x1317   :  { %v2076_v63 = vmul.f32 1.442695, %v2074_v62 }
0x1318   :  { %v2073_v0 = vpop.xlane.xlu1 %2072 }
0x1319   :  { %3306 = vpow2.f32 %v2076_v63  ;;  %v2075_v3 = vsub.f32 %v2067_v57, %v2073_v0 }
0x131b   :  { %v2078_v36 = vmul.f32 1.442695, %v2075_v3  ;;  %v2819_v3 = vld [vmem:[%s4066_s12 + $0x1] ss:$0 sm:$0xff] }
0x131d   :  { %3308 = vpow2.f32 %v2078_v36 }
0x1323   :  { %v3307_v5 = vpop.eup %3306 }
0x1324   :  { %v2080_v14 = vsel %vm439_vm4, %v3307_v5, 0.0 }
0x1325   :  { %2081 = vadd.xlane.f32.xlu1 %v2080_v14 }
0x1327   :  { %v3309_v6 = vpop.eup %3308 }
0x1328   :  { %v2083_v8 = vsel %vm439_vm4, %v3309_v6, 0.0 }
0x1329   :  { %2084 = vadd.xlane.f32.xlu0 %v2083_v8 }
0x13b2   :  { %v2082_v19 = vpop.xlane.xlu1 %2081 }
0x13b3   :  { %3310 = vrcp.f32 %v2082_v19 }
0x13b6   :  { %v2085_v10 = vpop.xlane.xlu0 %2084 }
0x13b7   :  { %3312 = vrcp.f32 %v2085_v10 }
0x13bd   :  { %v3311_v11 = vpop.eup %3310 }
0x13be   :  { %v2087_v12 = vmul.f32 %v3311_v11, %v3307_v5 }
0x13c0   :  { %v2090_v9 = vpack.c.bf16 %v2087_v12, %v2087_v12  ;;  %v3256_v12 = vld [vmem:[%s4070_s16 + $0x20] sm:$0xff]  }
0x13c1   :  { %v3313_v13 = vpop.eup %3312 }
0x13c2   :  { %v2089_v49 = vmul.f32 %v3313_v13, %v3309_v6  ;;  %3157 = vmatmul.mubr.msk.bf16.vlgmr.msra.gmra.mrb[56].mxu0 %vm439_vm4, %v2090_v9  ;;  %v2820_v6 = vld [vmem:[%s4067_s13 + $0x1] ss:$0 sm:$0xff]  ;;  %v3257_v9 = vld [vmem:[%s4070_s16 + $0x28] sm:$0xff]   ;;  %v3258_v13 = vld [vmem:[%s4070_s16 + $0x30] sm:$0xff]  }
0x13c3   :  { %3170 = vmatprep.mubr.msk.bf16.mxu0 %vm3379_vm1, %v3378_v16  ;;  %3167 = vmatpush3.bf16.msra.mxu0 %v3252_v17 }
0x13c4   :  { %v2091_v15 = vpack.c.bf16 %v2089_v49, %v2089_v49  ;;  %3168 = vmatprep.subr.bf16.mxu0 %v3378_v16  ;;  %v3259_v49 = vld [vmem:[%s4070_s16 + $0x38] sm:$0xff]  }
0x13c6   :  { %3163 = vmatmul.mubr.msk.bf16.vlgmr.msra.gmra.mrb[60].mxu1 %vm439_vm4, %v2091_v15  ;;  %v2826_v15 = vld [vmem:[%s4069_s15 + $0x1] ss:$0 sm:$0xff] }
0x13c7   :  { %3178 = vmatprep.mubr.msk.bf16.mxu1 %vm3379_vm1, %v3378_v16  ;;  %3169 = vmatpush3.bf16.msra.mxu0 %v3253_v18 }
0x13c8   :  { %3182 = vmatprep.subr.bf16.mxu0 %v3378_v16 }
0x1495   :  { %v2134_v20 = vpop.f32.mrb[56].mxu0 }
0x1496   :  { %v3158_v21 = vpop.f32.mrb[57].mxu0 }
0x1497   :  { %v2137_v22 = vpop.f32.mrb[58].mxu0 }
0x1498   :  { %v3159_v23 = vpop.f32.mrb[59].mxu0 }
0x1499   :  { %v2180_v24 = vpop.f32.mrb[60].mxu1 }
0x149a   :  { %v3215_v25 = vpack.i.bf16 %v2180_v24, %v2134_v20  ;;  %v3164_v26 = vpop.f32.mrb[61].mxu1 }
0x149b   :  { %v2183_v27 = vpop.f32.mrb[62].mxu1 }
0x149c   :  { %v3165_v28 = vpop.f32.mrb[63].mxu1  ;;  %3216 = vrot.lane.b32.xlu1 %v3215_v25, %s3380_s3 }
0x150e   :  { %v3217_v29 = vpop.permute.xlu1 %3216 }
0x150f   :  { %v3219_v1 = vunpack.i.h.bf16 %v3217_v29  ;;  %v3218_v2 = vunpack.i.l.bf16 %v3217_v29 }
0x1511   :  { %v2195_v30 = vsel %vm342_vm2, %v3894_v4, %v3219_v1  ;;  %v2194_v31 = vsel %vm342_vm2, %v3896_v7, %v3218_v2 }
0x1512   :  { %v2196_v32 = vpack.c.bf16 %v2195_v30, %v2194_v31 }
0x1514   :  { %3171 = vmatmul.mubr.msk.bf16.vlgmr.msra.gmra.mrb[60].mxu0 %vm80_vm0, %v2196_v32 }
0x1515   :  { %3190 = vmatprep.mubr.msk.bf16.mxu0 %vm3379_vm1, %v3378_v16  ;;  %3183 = vmatpush3.bf16.msra.mxu0 %v3256_v12 }
0x1516   :  { %3184 = vmatprep.subr.bf16.mxu0 %v3378_v16 }
0x1519   :  { %3185 = vmatpush3.bf16.msra.mxu0 %v3257_v9 }
0x151a   :  { %3186 = vmatprep.subr.bf16.mxu0 %v3378_v16 }
0x151d   :  { %3187 = vmatpush3.bf16.msra.mxu0 %v3258_v13  ;;  %v2839_v13 = vld [vmem:[%s4071_s17 + $0x1] ss:$0 sm:$0xff] }
0x151e   :  { %3188 = vmatprep.subr.bf16.mxu0 %v3378_v16 }
0x1521   :  { %3189 = vmatpush3.bf16.msra.mxu0 %v3259_v49 }
0x15e7   :  { %v2259_v61 = vpop.f32.mrb[60].mxu0 }
0x15e8   :  { %v2260_v58 = vadd.f32 %v2813_v35, %v2259_v61  ;;  %v3172_v37 = vpop.f32.mrb[61].mxu0 }
0x15e9   :  { %v2262_v38 = vpop.f32.mrb[62].mxu0 }
0x15ea   :  { %v2263_v39 = vadd.f32 %v2813_v35, %v2262_v38  ;;  %v3173_v40 = vpop.f32.mrb[63].mxu0  ;;  %v2266_v4 = vadd.f32 %v2260_v58, %v3795_v33 }
0x15ec   :  { %v2272_v7 = vsel %vm80_vm0, %v2266_v4, 0.0  ;;  %v2267_v41 = vadd.f32 %v2263_v39, %v3797_v34  ;;  %v3254_v34 = vld [vmem:[%s4068_s14 + $0x10] sm:$0xff]  }
0x15ed   :  { %2273 = vadd.xlane.f32.xlu0 %v2272_v7  ;;  %3175 = vmatpush3.bf16.msra.mxu1 %v3254_v34 }
0x15ee   :  { %v2275_v42 = vsel %vm80_vm0, %v2267_v41, 0.0  ;;  %3176 = vmatprep.subr.bf16.mxu1 %v3378_v16 }
0x15f1   :  { %2276 = vadd.xlane.f32.xlu0 %v2275_v42  ;;  %3177 = vmatpush3.bf16.msra.mxu1 %v3255_v53 }
0x15f2   :  { %3194 = vmatprep.subr.bf16.mxu1 %v3378_v16 }
0x167a   :  { %v2274_v43 = vpop.xlane.xlu0 %2273 }
0x167b   :  { %v2278_v44 = vmul.f32 0.03125, %v2274_v43 }
0x167d   :  { %v2280_v45 = vsub.f32 %v2266_v4, %v2278_v44 }
0x167e   :  { %v2277_v46 = vpop.xlane.xlu0 %2276 }
0x167f   :  { %v2279_v47 = vmul.f32 0.03125, %v2277_v46  ;;  %v2282_v48 = vmul.f32 %v2280_v45, %v2280_v45 }
0x1681   :  { %v2281_v50 = vsub.f32 %v2267_v41, %v2279_v47  ;;  %v2284_v51 = vsel %vm80_vm0, %v2282_v48, 0.0 }
0x1682   :  { %2285 = vadd.xlane.f32.xlu0 %v2284_v51 }
0x1683   :  { %v2283_v52 = vmul.f32 %v2281_v50, %v2281_v50 }
0x1685   :  { %v2287_v33 = vsel %vm80_vm0, %v2283_v52, 0.0 }
0x1686   :  { %2288 = vadd.xlane.f32.xlu0 %v2287_v33 }
0x170f   :  { %v2286_v55 = vpop.xlane.xlu0 %2285 }
0x1710   :  { %v2290_v56 = vmul.f32 0.03125, %v2286_v55 }
0x1712   :  { %v2292_v57 = vadd.f32 1e-07, %v2290_v56 }
0x1713   :  { %v2289_v59 = vpop.xlane.xlu0 %2288 }
0x1714   :  { %3314 = vrsqrt.f32 %v2292_v57  ;;  %v2291_v60 = vmul.f32 0.03125, %v2289_v59 }
0x1716   :  { %v2293_v62 = vadd.f32 1e-07, %v2291_v60 }
0x1718   :  { %3316 = vrsqrt.f32 %v2293_v62 }
0x171e   :  { %v3315_v63 = vpop.eup %3314 }
0x171f   :  { %v2296_v0 = vmul.f32 %v3315_v63, %v2280_v45 }
0x1721   :  { %v2304_v5 = vmul.f32 %v2819_v3, %v2296_v0 }
0x1722   :  { %v3317_v36 = vpop.eup %3316 }
0x1723   :  { %v2297_v14 = vmul.f32 %v3317_v36, %v2281_v50  ;;  %v3972_v19 = vadd.f32 %v2820_v6, %v2304_v5 }
0x1725   :  { %v2305_v8 = vmul.f32 %v2819_v3, %v2297_v14 }
0x1727   :  { %v3974_v10 = vadd.f32 %v2820_v6, %v2305_v8 }
0x1729   :  { %v2314_v11 = vpack.c.bf16 %v3974_v10, %v3972_v19 }
0x172b   :  { %3179 = vmatmul.mubr.msk.bf16.vlgmr.msra.gmra.mrb[64].mxu1 %vm80_vm0, %v2314_v11 }
0x172c   :  { %3198 = vmatprep.mubr.msk.bf16.mxu1 %vm3379_vm1, %v3378_v16 }
0x17fe   :  { %v2377_v17 = vpop.f32.mrb[64].mxu1 }
0x17ff   :  { %v2378_v18 = vadd.f32 %v2826_v15, %v2377_v17  ;;  %v3180_v20 = vpop.f32.mrb[65].mxu1 }
0x1800   :  { %v2380_v21 = vpop.f32.mrb[66].mxu1 }
0x1801   :  { %v2386_v22 = vmul.f32 0.70710677, %v2378_v18  ;;  %v2381_v23 = vadd.f32 %v2826_v15, %v2380_v21  ;;  %v3181_v24 = vpop.f32.mrb[67].mxu1  ;;  %v2384_v14 = vmul.f32 0.5, %v2378_v18 }
0x1803   :  { %v2392_v25 = vand.u32 2147483647, %v2386_v22  ;;  %v2387_v26 = vmul.f32 0.70710677, %v2381_v23  ;;  %vm2388_vm8 = vcmp.ge.f32.partialorder %v2386_v22, 0.0  ;;  %v2385_v6 = vmul.f32 0.5, %v2381_v23 }
0x1804   :  { %v2390_v60 = vsel %vm2388_vm8, 1.0, %v3381_v54 }
0x1805   :  { %v2394_v27 = vmul.f32 0.3275911, %v2392_v25  ;;  %v2393_v28 = vand.u32 2147483647, %v2387_v26  ;;  %v2418_v30 = vmul.f32 %v2392_v25, %v2392_v25  ;;  %vm2389_vm9 = vcmp.ge.f32.partialorder %v2387_v26, 0.0 }
0x1806   :  { %v2391_v3 = vsel %vm2389_vm9, 1.0, %v3381_v54 }
0x1807   :  { %v2396_v29 = vadd.f32 1.0, %v2394_v27  ;;  %v2395_v1 = vmul.f32 0.3275911, %v2393_v28  ;;  %v2419_v31 = vmul.f32 %v2393_v28, %v2393_v28  ;;  %v2420_v35 = vsub.f32 0.0, %v2418_v30 }
0x1809   :  { %3318 = vrcp.f32 %v2396_v29  ;;  %v2397_v2 = vadd.f32 1.0, %v2395_v1  ;;  %v2421_v38 = vsub.f32 0.0, %v2419_v31  ;;  %v2422_v39 = vmul.f32 1.442695, %v2420_v35 }
0x180b   :  { %3320 = vrcp.f32 %v2397_v2  ;;  %v2424_v42 = vmul.f32 1.442695, %v2421_v38 }
0x180c   :  { %3322 = vpow2.f32 %v2422_v39 }
0x180d   :  { %3324 = vpow2.f32 %v2424_v42 }
0x1813   :  { %v3319_v32 = vpop.eup %3318 }
0x1814   :  { %v2400_v61 = vmul.f32 1.0614054, %v3319_v32 }
0x1815   :  { %v3321_v58 = vpop.eup %3320 }
0x1816   :  { %v2402_v37 = vadd.f32 -1.4531521, %v2400_v61  ;;  %v2401_v40 = vmul.f32 1.0614054, %v3321_v58  ;;  %v3323_v34 = vpop.eup %3322 }
0x1817   :  { %v3325_v57 = vpop.eup %3324 }
0x1818   :  { %v2404_v4 = vmul.f32 %v3319_v32, %v2402_v37  ;;  %v2403_v7 = vadd.f32 -1.4531521, %v2401_v40 }
0x181a   :  { %v2406_v41 = vadd.f32 1.4214138, %v2404_v4  ;;  %v2405_v43 = vmul.f32 %v3321_v58, %v2403_v7  ;;  %v2847_v4 = vld [vmem:[%s4072_s18 + $0x1] ss:$0 sm:$0xff]  ;;  %s3382_s18 = smov [#allocation2]  }
0x181c   :  { %v2408_v44 = vmul.f32 %v3319_v32, %v2406_v41  ;;  %v2407_v45 = vadd.f32 1.4214138, %v2405_v43  ;;  %v2848_v41 = vld [vmem:[%s4073_s19 + $0x1] ss:$0 sm:$0xff]  ;;  %s2654_s19 = sshll.u32 %s3382_s18, 4  ;;  %s2655_s19 = int_to_ptr.vmem [resolvable:$true] %s2654_s19 }
0x181d   :  { %p3335_p1 = scmp.lt.s32.totalorder %s2655_s19, %s2655_s19 }
0x181e   :  { %v2410_v46 = vadd.f32 -0.28449672, %v2408_v44  ;;  %v2409_v47 = vmul.f32 %v3321_v58, %v2407_v45 }
0x1820   :  { %v2412_v48 = vmul.f32 %v3319_v32, %v2410_v46  ;;  %v2411_v50 = vadd.f32 -0.28449672, %v2409_v47 }
0x1822   :  { %v2414_v51 = vadd.f32 0.2548296, %v2412_v48  ;;  %v2413_v52 = vmul.f32 %v3321_v58, %v2411_v50 }
0x1824   :  { %v2416_v33 = vmul.f32 %v3319_v32, %v2414_v51  ;;  %v2415_v53 = vadd.f32 0.2548296, %v2413_v52  ;;  %v3261_v32 = vld [vmem:[%s4074_s20 + $0x8] sm:$0xff]  }
0x1826   :  { %v2426_v55 = vmul.f32 %v3323_v34, %v2416_v33  ;;  %v2417_v56 = vmul.f32 %v3321_v58, %v2415_v53 }
0x1828   :  { %v2428_v59 = vsub.f32 1.0, %v2426_v55  ;;  %v2427_v62 = vmul.f32 %v3325_v57, %v2417_v56 }
0x182a   :  { %v2430_v63 = vmul.f32 %v2428_v59, %v2390_v60  ;;  %v2429_v0 = vsub.f32 1.0, %v2427_v62 }
0x182c   :  { %v2432_v36 = vadd.f32 1.0, %v2430_v63  ;;  %v2431_v5 = vmul.f32 %v2429_v0, %v2391_v3 }
0x182e   :  { %v2433_v8 = vadd.f32 1.0, %v2431_v5  ;;  %v2434_v11 = vmul.f32 %v2432_v36, %v2384_v14 }
0x1830   :  { %v2435_v12 = vmul.f32 %v2433_v8, %v2385_v6 }
0x1832   :  { %v2436_v9 = vpack.c.bf16 %v2435_v12, %v2434_v11 }
0x1834   :  { %3191 = vmatmul.mubr.msk.bf16.vlgmr.msra.gmra.mrb[64].mxu0 %vm1259_vm7, %v2436_v9 }
0x1907   :  { %v2515_v49 = vpop.f32.mrb[64].mxu0 }
0x1908   :  { %v2516_v15 = vadd.f32 %v2839_v13, %v2515_v49  ;;  %v3192_v17 = vpop.f32.mrb[65].mxu0 }
0x1909   :  { %v2518_v20 = vpop.f32.mrb[66].mxu0 }
0x190a   :  { %v2519_v21 = vadd.f32 %v2839_v13, %v2518_v20  ;;  %v3193_v54 = vpop.f32.mrb[67].mxu0  ;;  %v2522_v22 = vadd.f32 %v2516_v15, %v3972_v19 }
0x190c   :  { %v2528_v18 = vsel %vm80_vm0, %v2522_v22, 0.0  ;;  %v2523_v23 = vadd.f32 %v2519_v21, %v3974_v10  ;;  %v3260_v10 = vld [vmem:[%s4074_s20] sm:$0xff]   ;;  %s3330_s20 = scalar_lea.vmem %s2655_s19, 256 }
0x190d   :  { %2529 = vadd.xlane.f32.xlu1 %v2528_v18  ;;  %3195 = vmatpush3.bf16.msra.mxu1 %v3260_v10  ;;  %p3331_p0 = scmp.ne.s32.totalorder %s2655_s19, %s3330_s20  ;;  %p3336_p2 = scmp.lt.s32.totalorder %s3330_s20, %s3330_s20 }
0x190e   :  { %v2531_v24 = vsel %vm80_vm0, %v2523_v23, 0.0  ;;  %3196 = vmatprep.subr.bf16.mxu1 %v3378_v16 }
0x190f   :  { %2532 = vadd.xlane.f32.xlu0 %v2531_v24  ;;  %p3337_p3 = por %p3336_p2, %p3335_p1 }
0x1911   :  { %3197 = vmatpush3.bf16.msra.mxu1 %v3261_v32  ;;  %p3338_p4 = pnand %p3337_p3, %p3331_p0 }
0x199a   :  { %v2530_v25 = vpop.xlane.xlu1 %2529 }
0x199b   :  { %v2534_v26 = vmul.f32 0.03125, %v2530_v25 }
0x199c   :  { %v2533_v27 = vpop.xlane.xlu0 %2532 }
0x199d   :  { %v2535_v28 = vmul.f32 0.03125, %v2533_v27  ;;  %v2536_v29 = vsub.f32 %v2522_v22, %v2534_v26 }
0x199f   :  { %v2537_v1 = vsub.f32 %v2523_v23, %v2535_v28  ;;  %v2538_v31 = vmul.f32 %v2536_v29, %v2536_v29 }
0x19a1   :  { %v2539_v2 = vmul.f32 %v2537_v1, %v2537_v1  ;;  %v2540_v19 = vsel %vm80_vm0, %v2538_v31, 0.0 }
0x19a3   :  { %v2543_v30 = vsel %vm80_vm0, %v2539_v2, 0.0 }
0x19a4   :  { %2544 = vadd.xlane.f32.xlu0 %v2543_v30 }
0x19a8   :  { %2541 = vadd.xlane.f32.xlu0 %v2540_v19 }
0x1a31   :  { %v2545_v35 = vpop.xlane.xlu0 %2544 }
0x1a32   :  { %v2547_v61 = vmul.f32 0.03125, %v2545_v35 }
0x1a34   :  { %v2549_v58 = vadd.f32 1e-07, %v2547_v61 }
0x1a35   :  { %v2542_v37 = vpop.xlane.xlu0 %2541 }
0x1a36   :  { %3326 = vrsqrt.f32 %v2549_v58  ;;  %v2546_v38 = vmul.f32 0.03125, %v2542_v37 }
0x1a38   :  { %v2548_v39 = vadd.f32 1e-07, %v2546_v38 }
0x1a3a   :  { %3328 = vrsqrt.f32 %v2548_v39 }
0x1a40   :  { %v3327_v40 = vpop.eup %3326 }
0x1a41   :  { %v2553_v7 = vmul.f32 %v3327_v40, %v2537_v1 }
0x1a43   :  { %v2561_v16 = vmul.f32 %v2847_v4, %v2553_v7 }
0x1a44   :  { %v3329_v42 = vpop.eup %3328 }
0x1a45   :  { %v2569_v43 = vadd.f32 %v2848_v41, %v2561_v16  ;;  %v2552_v44 = vmul.f32 %v3329_v42, %v2536_v29 }
0x1a47   :  { %2571 = vst.msk [vmem:[#allocation2 + $0x8] sm:$0xff] %vm80_vm0, %v2569_v43  ;;  %v2560_v45 = vmul.f32 %v2847_v4, %v2552_v44  ;;  %v2573_v46 = vpack.c.bf16 %v2569_v43, %v2569_v43 }
0x1a49   :  { %v2568_v47 = vadd.f32 %v2848_v41, %v2560_v45  ;;  %v2588_v48 = vunpack.c.l.b16 %v2573_v46 }
0x1a4b   :  { %2570 = vst.msk [vmem:[#allocation2] sm:$0xff] %vm80_vm0, %v2568_v47  ;;  %v2572_v50 = vpack.c.bf16 %v2568_v47, %v2568_v47  ;;  %v2589_v52 = vrot.slane %v2588_v48, 7 }
0x1a4d   :  { %v2587_v51 = vunpack.c.l.b16 %v2572_v50 }
0x1a4f   :  { %v2591_v33 = vsel %vm2590_vm10, %v2589_v52, %v2587_v51 }
0x1a50   :  { %v2592_v34 = vpack.c.b16 %v2591_v33, %v2591_v33 }
0x1a52   :  { %3199 = vmatmul.mubr.msk.bf16.vlgmr.msra.gmra.mrb[68].mxu1 %vm80_vm0, %v2592_v34 }
0x1a53   :  { %3341 = shalt.err (!%p3338_p4)
}
0x1a54   :  { %s3342_s2 = scalar_lea.hbm %s4076_s22, 256 }
0x1a55   :  { %p3343_p5 = scmp.ne.s32.totalorder %s4076_s22, %s3342_s2  ;;  %p3346_p6 = scmp.lt.u32.totalorder %s3342_s2, %s4076_s22 }
0x1a57   :  { %p3348_p7 = pnand %p3346_p6, %p3343_p5 }
0x1a59   :  { %3351 = shalt.err (!%p3348_p7)
}
0x1a5a   :  { %s3383_s13 = smov 128   ;;  %s3384_s5 = smov 8   ;;  %v2849_v53 = vld [vmem:[%s4075_s21] ss:$0 sm:$0xff] }
0x1a5b   :  { %2660 = dma.vmem_to_hbm [thread:$0]  %s2655_s19, 256, %s4076_s22, [#allocation3], %s3383_s13, %s3383_s13, %s3384_s5  }
0x1a5c   :  { %s3385_s9 = smov [#allocation4]  }
0x1a5d   :  { %s2667_s24 = sshll.u32 %s3385_s9, 4  ;;  %s2668_s24 = int_to_ptr.vmem [resolvable:$true] %s2667_s24 }
0x1a5e   :  { %s3352_s15 = scalar_lea.vmem %s2668_s24, 32  ;;  %p3357_p9 = scmp.lt.s32.totalorder %s2668_s24, %s2668_s24 }
0x1a5f   :  { %p3353_p8 = scmp.ne.s32.totalorder %s2668_s24, %s3352_s15  ;;  %p3358_p10 = scmp.lt.s32.totalorder %s3352_s15, %s3352_s15 }
0x1a61   :  { %p3359_p11 = por %p3358_p10, %p3357_p9 }
0x1a63   :  { %p3360_p12 = pnand %p3359_p11, %p3353_p8 }
0x1b25   :  { %v2642_v55 = vpop.f32.mrb[68].mxu1 }
0x1b26   :  { %v2643_v56 = vadd.f32 %v2849_v53, %v2642_v55  ;;  %v3200_v57 = vpop.f32.mrb[69].mxu1 }
0x1b27   :  { %v2645_v59 = vpop.f32.mrb[70].mxu1 }
0x1b28   :  { %2648 = vst [vmem:[#allocation4] sm:$0x3] %v2643_v56  ;;  %v3201_v60 = vpop.f32.mrb[71].mxu1 }
0x1b29   :  { %3363 = shalt.err (!%p3360_p12)
}
0x1b2a   :  { %s3364_s21 = scalar_lea.hbm %s4077_s23, 32 }
0x1b2b   :  { %p3365_p13 = scmp.ne.s32.totalorder %s4077_s23, %s3364_s21  ;;  %p3368_p0 = scmp.lt.u32.totalorder %s3364_s21, %s4077_s23 }
0x1b2d   :  { %p3370_p1 = pnand %p3368_p0, %p3365_p13 }
0x1b2f   :  { %3373 = shalt.err (!%p3370_p1)
}
0x1b30   :  { %2670 = dma.vmem_to_hbm [thread:$0]  %s2668_s24, 32, %s4077_s23, [#allocation5]  }
0x1b31   :  { %3374 = dma.done.wait [#allocation3], 256  }
0x1b32   :  { %3375 = vsyncadd [#allocation3], 4294967040 }
0x1b33   :  { %3376 = dma.done.wait [#allocation5], 32  }
0x1b34   :  { %3377 = vsyncadd [#allocation5], 4294967264 }
0x1b35   :  { %2677 = vsyncpa [#allocation3], 1 }
0x1b36   :  { %2678 = vsyncpa [#allocation5], 1 }

</bundles_post_ra>
